<compile_context>
chip_gen: v7x
topology: tpu7x:2x2x1
jax: 0.10.0
libtpu: 0.0.40
codegen_flags: <defaults>
</compile_context>

<pallas_src>
import numpy as np
import jax
import jax.numpy as jnp
from jax import lax
from jax.experimental import pallas as pl
from jax.experimental.pallas import tpu as pltpu

NBINS = 10              # histogram bins; valid buckets are [0, 9] (resmap in [0, 1))
NCLS = 2 * NBINS        # 20 classes = bucket + NBINS * (gt > 0.5)
NCLS_PAD = 24           # accumulator class rows padded to a sublane multiple
LANE = 512              # lane-dense tile width (multiple of 128)
TM_MAX = 1024           # rows per tile (<= 2040 so the 8-bit count fields can't overflow)
SUBLANES = 8            # strip height = one sublane group
NPACK = NBINS // 2      # 2 buckets packed per int32 (4 x 8-bit count fields)
UNROLL = 8              # strips per fori_loop body
NCORES = 2              # leading "parallel" grid axis (v7x 2 TCs; no-op on v5e/v6e)


def _round_up(x, m):
    return ((x + m - 1) // m) * m


def _make_kernel(tm, steps_per_core, nrows_valid, needs_mask):
    """Build the kernel for a fixed (static under jit) tiling configuration."""
    assert tm % SUBLANES == 0
    n_strips = tm // SUBLANES
    assert n_strips <= 255, "8-bit packed count fields would overflow"

    def kernel(res_ref, gt_ref, acc_ref):
        # Zero this core's accumulator slab on its first reduction step.
        @pl.when(pl.program_id(1) == 0)
        def _init():
            acc_ref[...] = jnp.zeros_like(acc_ref)

        if needs_mask:
            # Static shapes -> valid row count is a compile-time constant; only
            # tail/duplicate blocks pay the 2 extra VALU ops/elem for masking.
            blk = pl.program_id(0) * steps_per_core + pl.program_id(1)
            tile_row0 = blk * tm
            row_iota = lax.broadcasted_iota(jnp.int32, (SUBLANES, LANE), 0)  # hoisted

        def strip_step(s, carry):
            row0 = s * SUBLANES
            if not isinstance(row0, int):
                row0 = pl.multiple_of(row0, SUBLANES)
            r = res_ref[pl.ds(row0, SUBLANES), :].astype(jnp.float32)  # (8, LANE)
            g = gt_ref[pl.ds(row0, SUBLANES), :]                       # native dtype

            # int(resmap / 0.1): exact f32 divide (NOT *10 / approx reciprocal,
            # for bit-parity at bucket boundaries) + truncation toward zero.
            bucket = (r / jnp.float32(0.1)).astype(jnp.int32)
            if needs_mask:
                v = nrows_valid - (tile_row0 + s * SUBLANES)
                bucket = jnp.where(row_iota < v, bucket, -1)  # invalid rows never match

            # Packed weights: low int32 half counts bucket 2p (nor bits 0-7,
            # ano bits 8-15), high half counts bucket 2p+1 (bits 16-23 / 24-31).
            is_ano = g > 0.5
            w_lo = jnp.where(is_ano, jnp.int32(1 << 8), jnp.int32(1))
            w_hi = w_lo << 16

            out = []
            for p in range(NPACK):
                upd = (jnp.where(bucket == 2 * p, w_lo, 0)
                       + jnp.where(bucket == 2 * p + 1, w_hi, 0))
                out.append(carry[p] + upd)          # (8, LANE) int32, stays in vregs
            return tuple(out)

        carry = tuple(jnp.zeros((SUBLANES, LANE), jnp.int32) for _ in range(NPACK))
        n_main = (n_strips // UNROLL) * UNROLL
        if n_main:
            def unrolled_body(j, c):
                base = j * UNROLL
                for u in range(UNROLL):
                    c = strip_step(base + u, c)
                return c
            carry = lax.fori_loop(0, n_main // UNROLL, unrolled_body, carry)
        for s in range(n_main, n_strips):           # static remainder strips (< UNROLL)
            carry = strip_step(s, carry)

        # Unpack + sublane-reduce once per tile, then one bulk accumulator update.
        nor_rows, ano_rows = [], []
        for p in range(NPACK):
            x = carry[p]
            nor_rows.append(jnp.sum(x & 0xFF, axis=0, keepdims=True))          # bucket 2p
            nor_rows.append(jnp.sum((x >> 16) & 0xFF, axis=0, keepdims=True))  # bucket 2p+1
            ano_rows.append(jnp.sum((x >> 8) & 0xFF, axis=0, keepdims=True))   # bucket 2p
            ano_rows.append(jnp.sum((x >> 24) & 0xFF, axis=0, keepdims=True))  # bucket 2p+1
        pad_rows = jnp.zeros((NCLS_PAD - NCLS, LANE), jnp.int32)
        update = jnp.concatenate(nor_rows + ano_rows + [pad_rows], axis=0)      # (24, LANE)
        acc_ref[...] = acc_ref[...] + update

    return kernel


@jax.jit
def count_res_histograms(resmap, gtmap):
    """One forward pass: returns (anoCount_delta, norCount_delta), each (NBINS,) int32."""
    res_flat = resmap.reshape(-1)        # keep native dtype (no f32 upcast in wrapper)
    gt_flat = gtmap.reshape(-1)
    total = res_flat.shape[0]
    assert gt_flat.shape[0] == total

    # Pad only to a LANE multiple (<= LANE-1 elements; skipped when aligned).
    # Sentinel -1.0 -> negative bucket -> never matches any class in-kernel.
    padded = _round_up(total, LANE)
    pad = padded - total
    if pad:
        res_flat = jnp.concatenate(
            [res_flat, jnp.full((pad,), -1.0, dtype=res_flat.dtype)])
        gt_flat = jnp.concatenate(
            [gt_flat, jnp.zeros((pad,), dtype=gt_flat.dtype)])

    rows = padded // LANE
    res2d = res_flat.reshape(rows, LANE)
    gt2d = gt_flat.reshape(rows, LANE)

    # Tile rows: big for large inputs; shrunk (to a sublane multiple) for small
    # ones so both cores get work and partial blocks stay cheap.
    tm = min(TM_MAX, _round_up(-(-rows // NCORES), SUBLANES))
    nblocks = -(-rows // tm)
    steps_per_core = -(-nblocks // NCORES)
    covered = NCORES * steps_per_core * tm
    needs_mask = covered != rows         # tail rows / duplicate blocks need masking

    kernel = _make_kernel(tm, steps_per_core, rows, needs_mask)

    def in_map(c, i):
        # Clamp so DMA never starts fully past the array; out-of-assignment
        # (duplicate) blocks are masked to zero contribution in-kernel.
        return (jnp.minimum(c * steps_per_core + i, nblocks - 1), 0)

    acc = pl.pallas_call(
        kernel,
        out_shape=jax.ShapeDtypeStruct((NCORES, NCLS_PAD, LANE), jnp.int32),
        grid=(NCORES, steps_per_core),
        in_specs=[
            pl.BlockSpec((tm, LANE), in_map),
            pl.BlockSpec((tm, LANE), in_map),
        ],
        # Per-core resident accumulator: block index constant along the
        # reduction axis i, varies only with the parallel core axis c.
        out_specs=pl.BlockSpec((None, NCLS_PAD, LANE), lambda c, i: (c, 0, 0)),
        compiler_params=pltpu.CompilerParams(
            dimension_semantics=("parallel", "arbitrary")),
    )(res2d, gt2d)

    # Tiny epilogue reduce (2*24*512 int32 ~= 96 KiB), done once outside the kernel.
    totals = jnp.sum(acc, axis=(0, 2))                  # (NCLS_PAD,) int32
    nor = totals[:NBINS]
    ano = totals[NBINS:NCLS]
    return ano, nor


class CountRes:
    """JAX/Pallas equivalent of the PyTorch countRes module (stateful counters).

    Running counters are host numpy int64 (torch.tensor([0]*10) is int64), so
    accumulation across many calls cannot overflow; the per-call kernel deltas
    are int32 (exact for any single call with < 2**31 pixels).

    Documented divergences from the PyTorch reference:
      * resmap < 0 or >= 1.0: torch would wrap/raise on the out-of-range index;
        this kernel drops such pixels.
      * gtmap is compared in its native dtype (exact for float/bool/u8 masks).
    """

    def __init__(self, savepath="/dev/null"):
        self.anoCount = np.zeros((NBINS,), dtype=np.int64)
        self.norCount = np.zeros((NBINS,), dtype=np.int64)
        self.savepath = savepath

    def forward(self, resmap, gtmap):
        ano, nor = count_res_histograms(resmap, gtmap)
        ano, nor = jax.block_until_ready((ano, nor))
        self.anoCount = self.anoCount + np.asarray(ano, dtype=np.int64)
        self.norCount = self.norCount + np.asarray(nor, dtype=np.int64)

    # TODO(synk): saveCountRes writes the counters to a text file; host-side
    # file I/O is out of scope for the kernel.


def _numpy_reference(resmap, gtmap):
    r = np.asarray(resmap, dtype=np.float32).reshape(-1)
    g = np.asarray(gtmap, dtype=np.float32).reshape(-1)
    bucket = (r / np.float32(0.1)).astype(np.int64)     # trunc toward zero == int()
    is_ano = g > 0.5
    ano = np.zeros((NBINS,), dtype=np.int64)
    nor = np.zeros((NBINS,), dtype=np.int64)
    valid = (bucket >= 0) & (bucket < NBINS)
    np.add.at(ano, bucket[valid & is_ano], 1)
    np.add.at(nor, bucket[valid & ~is_ano], 1)
    return ano, nor


if __name__ == "__main__":
    key = jax.random.PRNGKey(0)

    def run_case(k, b, h, w):
        k1, k2 = jax.random.split(k)
        resmap = jax.random.uniform(k1, (b, h, w), dtype=jnp.float32)    # buckets 0..9
        gtmap = jax.random.uniform(k2, (b, 1, h, w), dtype=jnp.float32)  # soft mask
        ano, nor = jax.block_until_ready(count_res_histograms(resmap, gtmap))
        ref_ano, ref_nor = _numpy_reference(resmap, gtmap)
        assert np.array_equal(np.asarray(ano, dtype=np.int64), ref_ano), (ano, ref_ano)
        assert np.array_equal(np.asarray(nor, dtype=np.int64), ref_nor), (nor, ref_nor)
        assert int(np.asarray(ano).sum() + np.asarray(nor).sum()) == b * h * w
        return resmap, gtmap, ref_ano, ref_nor

    k_small, k_big, k_odd = jax.random.split(key, 3)

    # Small case matching the module's toy usage (LANE-aligned, no masking path).
    resmap, gtmap, ref_ano, ref_nor = run_case(k_small, 2, 16, 16)

    # Larger case: exercises both cores and the strip/unroll loop.
    run_case(k_big, 3, 320, 320)

    # Unaligned case: exercises LANE-padding, tail-row masking and clamped
    # duplicate blocks on the second core.
    run_case(k_odd, 2, 17, 23)

    # Stateful wrapper accumulates across calls, like the nn.Module.
    module = CountRes()
    module.forward(resmap, gtmap)
    module.forward(resmap, gtmap)
    assert np.array_equal(module.anoCount, 2 * ref_ano)
    assert np.array_equal(module.norCount, 2 * ref_nor)

    print("KERNEL_OK")
</pallas_src>

<mosaic_0001>
module attributes {stable_mosaic.version = 11 : i64} {
  func.func @kernel(%arg0: i32, %arg1: i32, %arg2: memref<8x512xf32, #tpu.memory_space<vmem>>, %arg3: memref<8x512xf32, #tpu.memory_space<vmem>>, %arg4: memref<1x24x512xi32, #tpu.memory_space<vmem>>) attributes {dimension_semantics = [#tpu.dimension_semantics<parallel>, #tpu.dimension_semantics<arbitrary>], iteration_bounds = array<i64: 2, 1>, scalar_prefetch = 0 : i64, scratch_operands = 0 : i64, tpu.core_type = #tpu.core_type<tc>, window_params = [{transform_indices = @transform_0, window_bounds = array<i64: 8, 512>}, {transform_indices = @transform_1, window_bounds = array<i64: 8, 512>}, {transform_indices = @transform_2, window_bounds = array<i64: 1, 24, 512>}]} {
    %c0_i32 = arith.constant 0 : i32
    %0 = arith.cmpi eq, %arg1, %c0_i32 : i32
    %1 = arith.extui %0 : i1 to i32
    %c0_i32_0 = arith.constant 0 : i32
    %2 = arith.cmpi ne, %1, %c0_i32_0 : i32
    scf.if %2 {
      %c0_i32_86 = arith.constant 0 : i32
      %200 = vector.broadcast %c0_i32_86 : i32 to vector<24x512xi32>
      %c0_87 = arith.constant 0 : index
      %c0_88 = arith.constant 0 : index
      %c0_89 = arith.constant 0 : index
      %201 = vector.load %arg4[%c0_87, %c0_88, %c0_89] : memref<1x24x512xi32, #tpu.memory_space<vmem>>, vector<1x24x512xi32>
      %202 = vector.shape_cast %201 : vector<1x24x512xi32> to vector<24x512xi32>
      %203 = vector.shape_cast %200 : vector<24x512xi32> to vector<1x24x512xi32>
      tpu.vector_store %arg4[%c0_87, %c0_88, %c0_89], %203 {strides = array<i32>} : memref<1x24x512xi32, #tpu.memory_space<vmem>>, vector<1x24x512xi32>,
    } else {
    }
    %c1_i32 = arith.constant 1 : i32
    %3 = arith.muli %arg0, %c1_i32 : i32
    %4 = arith.addi %3, %arg1 : i32
    %c8_i32 = arith.constant 8 : i32
    %5 = arith.muli %4, %c8_i32 : i32
    %6 = tpu.iota {dimensions = array<i32: 0>} : vector<8x512xi32>
    %c0_i32_1 = arith.constant 0 : i32
    %7 = vector.broadcast %c0_i32_1 : i32 to vector<8x512xi32>
    %c0_i32_2 = arith.constant 0 : i32
    %8 = vector.broadcast %c0_i32_2 : i32 to vector<8x512xi32>
    %c0_i32_3 = arith.constant 0 : i32
    %9 = vector.broadcast %c0_i32_3 : i32 to vector<8x512xi32>
    %c0_i32_4 = arith.constant 0 : i32
    %10 = vector.broadcast %c0_i32_4 : i32 to vector<8x512xi32>
    %c0_i32_5 = arith.constant 0 : i32
    %11 = vector.broadcast %c0_i32_5 : i32 to vector<8x512xi32>
    %c0 = arith.constant 0 : index
    %c0_6 = arith.constant 0 : index
    %12 = vector.load %arg2[%c0, %c0_6] : memref<8x512xf32, #tpu.memory_space<vmem>>, vector<8x512xf32>
    %c0_7 = arith.constant 0 : index
    %c0_8 = arith.constant 0 : index
    %13 = vector.load %arg3[%c0_7, %c0_8] : memref<8x512xf32, #tpu.memory_space<vmem>>, vector<8x512xf32>
    %cst = arith.constant 1.000000e-01 : f32
    %14 = vector.broadcast %cst : f32 to vector<8x512xf32>
    %15 = arith.divf %12, %14 : vector<8x512xf32>
    %16 = arith.fptosi %15 : vector<8x512xf32> to vector<8x512xi32>
    %c0_i32_9 = arith.constant 0 : i32
    %17 = arith.addi %5, %c0_i32_9 : i32
    %c1_i32_10 = arith.constant 1 : i32
    %18 = arith.subi %c1_i32_10, %17 : i32
    %19 = vector.broadcast %18 : i32 to vector<8x512xi32>
    %20 = arith.cmpi slt, %6, %19 : vector<8x512xi32>
    %c-1_i32 = arith.constant -1 : i32
    %21 = vector.broadcast %c-1_i32 : i32 to vector<8x512xi32>
    %22 = arith.select %20, %16, %21 : vector<8x512xi1>, vector<8x512xi32>
    %cst_11 = arith.constant 5.000000e-01 : f32
    %23 = vector.broadcast %cst_11 : f32 to vector<8x512xf32>
    %24 = arith.cmpf ogt, %13, %23 : vector<8x512xf32>
    %c256_i32 = arith.constant 256 : i32
    %c1_i32_12 = arith.constant 1 : i32
    %25 = vector.broadcast %c256_i32 : i32 to vector<8x512xi32>
    %26 = vector.broadcast %c1_i32_12 : i32 to vector<8x512xi32>
    %27 = arith.select %24, %25, %26 : vector<8x512xi1>, vector<8x512xi32>
    %c16_i32 = arith.constant 16 : i32
    %28 = vector.broadcast %c16_i32 : i32 to vector<8x512xi32>
    %29 = arith.shli %27, %28 : vector<8x512xi32>
    %c0_i32_13 = arith.constant 0 : i32
    %30 = vector.broadcast %c0_i32_13 : i32 to vector<8x512xi32>
    %31 = arith.cmpi eq, %22, %30 : vector<8x512xi32>
    %c0_i32_14 = arith.constant 0 : i32
    %32 = vector.broadcast %c0_i32_14 : i32 to vector<8x512xi32>
    %33 = arith.select %31, %27, %32 : vector<8x512xi1>, vector<8x512xi32>
    %c1_i32_15 = arith.constant 1 : i32
    %34 = vector.broadcast %c1_i32_15 : i32 to vector<8x512xi32>
    %35 = arith.cmpi eq, %22, %34 : vector<8x512xi32>
    %c0_i32_16 = arith.constant 0 : i32
    %36 = vector.broadcast %c0_i32_16 : i32 to vector<8x512xi32>
    %37 = arith.select %35, %29, %36 : vector<8x512xi1>, vector<8x512xi32>
    %38 = arith.addi %33, %37 : vector<8x512xi32>
    %39 = arith.addi %7, %38 : vector<8x512xi32>
    %c2_i32 = arith.constant 2 : i32
    %40 = vector.broadcast %c2_i32 : i32 to vector<8x512xi32>
    %41 = arith.cmpi eq, %22, %40 : vector<8x512xi32>
    %c0_i32_17 = arith.constant 0 : i32
    %42 = vector.broadcast %c0_i32_17 : i32 to vector<8x512xi32>
    %43 = arith.select %41, %27, %42 : vector<8x512xi1>, vector<8x512xi32>
    %c3_i32 = arith.constant 3 : i32
    %44 = vector.broadcast %c3_i32 : i32 to vector<8x512xi32>
    %45 = arith.cmpi eq, %22, %44 : vector<8x512xi32>
    %c0_i32_18 = arith.constant 0 : i32
    %46 = vector.broadcast %c0_i32_18 : i32 to vector<8x512xi32>
    %47 = arith.select %45, %29, %46 : vector<8x512xi1>, vector<8x512xi32>
    %48 = arith.addi %43, %47 : vector<8x512xi32>
    %49 = arith.addi %8, %48 : vector<8x512xi32>
    %c4_i32 = arith.constant 4 : i32
    %50 = vector.broadcast %c4_i32 : i32 to vector<8x512xi32>
    %51 = arith.cmpi eq, %22, %50 : vector<8x512xi32>
    %c0_i32_19 = arith.constant 0 : i32
    %52 = vector.broadcast %c0_i32_19 : i32 to vector<8x512xi32>
    %53 = arith.select %51, %27, %52 : vector<8x512xi1>, vector<8x512xi32>
    %c5_i32 = arith.constant 5 : i32
    %54 = vector.broadcast %c5_i32 : i32 to vector<8x512xi32>
    %55 = arith.cmpi eq, %22, %54 : vector<8x512xi32>
    %c0_i32_20 = arith.constant 0 : i32
    %56 = vector.broadcast %c0_i32_20 : i32 to vector<8x512xi32>
    %57 = arith.select %55, %29, %56 : vector<8x512xi1>, vector<8x512xi32>
    %58 = arith.addi %53, %57 : vector<8x512xi32>
    %59 = arith.addi %9, %58 : vector<8x512xi32>
    %c6_i32 = arith.constant 6 : i32
    %60 = vector.broadcast %c6_i32 : i32 to vector<8x512xi32>
    %61 = arith.cmpi eq, %22, %60 : vector<8x512xi32>
    %c0_i32_21 = arith.constant 0 : i32
    %62 = vector.broadcast %c0_i32_21 : i32 to vector<8x512xi32>
    %63 = arith.select %61, %27, %62 : vector<8x512xi1>, vector<8x512xi32>
    %c7_i32 = arith.constant 7 : i32
    %64 = vector.broadcast %c7_i32 : i32 to vector<8x512xi32>
    %65 = arith.cmpi eq, %22, %64 : vector<8x512xi32>
    %c0_i32_22 = arith.constant 0 : i32
    %66 = vector.broadcast %c0_i32_22 : i32 to vector<8x512xi32>
    %67 = arith.select %65, %29, %66 : vector<8x512xi1>, vector<8x512xi32>
    %68 = arith.addi %63, %67 : vector<8x512xi32>
    %69 = arith.addi %10, %68 : vector<8x512xi32>
    %c8_i32_23 = arith.constant 8 : i32
    %70 = vector.broadcast %c8_i32_23 : i32 to vector<8x512xi32>
    %71 = arith.cmpi eq, %22, %70 : vector<8x512xi32>
    %c0_i32_24 = arith.constant 0 : i32
    %72 = vector.broadcast %c0_i32_24 : i32 to vector<8x512xi32>
    %73 = arith.select %71, %27, %72 : vector<8x512xi1>, vector<8x512xi32>
    %c9_i32 = arith.constant 9 : i32
    %74 = vector.broadcast %c9_i32 : i32 to vector<8x512xi32>
    %75 = arith.cmpi eq, %22, %74 : vector<8x512xi32>
    %c0_i32_25 = arith.constant 0 : i32
    %76 = vector.broadcast %c0_i32_25 : i32 to vector<8x512xi32>
    %77 = arith.select %75, %29, %76 : vector<8x512xi1>, vector<8x512xi32>
    %78 = arith.addi %73, %77 : vector<8x512xi32>
    %79 = arith.addi %11, %78 : vector<8x512xi32>
    %c255_i32 = arith.constant 255 : i32
    %80 = vector.broadcast %c255_i32 : i32 to vector<8x512xi32>
    %81 = arith.andi %39, %80 : vector<8x512xi32>
    %cst_26 = arith.constant dense<0> : vector<512xi32>
    %82 = vector.multi_reduction <add>, %81, %cst_26 [0] : vector<8x512xi32> to vector<512xi32>
    %83 = vector.shape_cast %82 : vector<512xi32> to vector<1x512xi32>
    %c16_i32_27 = arith.constant 16 : i32
    %84 = vector.broadcast %c16_i32_27 : i32 to vector<8x512xi32>
    %85 = arith.shrsi %39, %84 : vector<8x512xi32>
    %c255_i32_28 = arith.constant 255 : i32
    %86 = vector.broadcast %c255_i32_28 : i32 to vector<8x512xi32>
    %87 = arith.andi %85, %86 : vector<8x512xi32>
    %cst_29 = arith.constant dense<0> : vector<512xi32>
    %88 = vector.multi_reduction <add>, %87, %cst_29 [0] : vector<8x512xi32> to vector<512xi32>
    %89 = vector.shape_cast %88 : vector<512xi32> to vector<1x512xi32>
    %c8_i32_30 = arith.constant 8 : i32
    %90 = vector.broadcast %c8_i32_30 : i32 to vector<8x512xi32>
    %91 = arith.shrsi %39, %90 : vector<8x512xi32>
    %c255_i32_31 = arith.constant 255 : i32
    %92 = vector.broadcast %c255_i32_31 : i32 to vector<8x512xi32>
    %93 = arith.andi %91, %92 : vector<8x512xi32>
    %cst_32 = arith.constant dense<0> : vector<512xi32>
    %94 = vector.multi_reduction <add>, %93, %cst_32 [0] : vector<8x512xi32> to vector<512xi32>
    %95 = vector.shape_cast %94 : vector<512xi32> to vector<1x512xi32>
    %c24_i32 = arith.constant 24 : i32
    %96 = vector.broadcast %c24_i32 : i32 to vector<8x512xi32>
    %97 = arith.shrsi %39, %96 : vector<8x512xi32>
    %c255_i32_33 = arith.constant 255 : i32
    %98 = vector.broadcast %c255_i32_33 : i32 to vector<8x512xi32>
    %99 = arith.andi %97, %98 : vector<8x512xi32>
    %cst_34 = arith.constant dense<0> : vector<512xi32>
    %100 = vector.multi_reduction <add>, %99, %cst_34 [0] : vector<8x512xi32> to vector<512xi32>
    %101 = vector.shape_cast %100 : vector<512xi32> to vector<1x512xi32>
    %c255_i32_35 = arith.constant 255 : i32
    %102 = vector.broadcast %c255_i32_35 : i32 to vector<8x512xi32>
    %103 = arith.andi %49, %102 : vector<8x512xi32>
    %cst_36 = arith.constant dense<0> : vector<512xi32>
    %104 = vector.multi_reduction <add>, %103, %cst_36 [0] : vector<8x512xi32> to vector<512xi32>
    %105 = vector.shape_cast %104 : vector<512xi32> to vector<1x512xi32>
    %c16_i32_37 = arith.constant 16 : i32
    %106 = vector.broadcast %c16_i32_37 : i32 to vector<8x512xi32>
    %107 = arith.shrsi %49, %106 : vector<8x512xi32>
    %c255_i32_38 = arith.constant 255 : i32
    %108 = vector.broadcast %c255_i32_38 : i32 to vector<8x512xi32>
    %109 = arith.andi %107, %108 : vector<8x512xi32>
    %cst_39 = arith.constant dense<0> : vector<512xi32>
    %110 = vector.multi_reduction <add>, %109, %cst_39 [0] : vector<8x512xi32> to vector<512xi32>
    %111 = vector.shape_cast %110 : vector<512xi32> to vector<1x512xi32>
    %c8_i32_40 = arith.constant 8 : i32
    %112 = vector.broadcast %c8_i32_40 : i32 to vector<8x512xi32>
    %113 = arith.shrsi %49, %112 : vector<8x512xi32>
    %c255_i32_41 = arith.constant 255 : i32
    %114 = vector.broadcast %c255_i32_41 : i32 to vector<8x512xi32>
    %115 = arith.andi %113, %114 : vector<8x512xi32>
    %cst_42 = arith.constant dense<0> : vector<512xi32>
    %116 = vector.multi_reduction <add>, %115, %cst_42 [0] : vector<8x512xi32> to vector<512xi32>
    %117 = vector.shape_cast %116 : vector<512xi32> to vector<1x512xi32>
    %c24_i32_43 = arith.constant 24 : i32
    %118 = vector.broadcast %c24_i32_43 : i32 to vector<8x512xi32>
    %119 = arith.shrsi %49, %118 : vector<8x512xi32>
    %c255_i32_44 = arith.constant 255 : i32
    %120 = vector.broadcast %c255_i32_44 : i32 to vector<8x512xi32>
    %121 = arith.andi %119, %120 : vector<8x512xi32>
    %cst_45 = arith.constant dense<0> : vector<512xi32>
    %122 = vector.multi_reduction <add>, %121, %cst_45 [0] : vector<8x512xi32> to vector<512xi32>
    %123 = vector.shape_cast %122 : vector<512xi32> to vector<1x512xi32>
    %c255_i32_46 = arith.constant 255 : i32
    %124 = vector.broadcast %c255_i32_46 : i32 to vector<8x512xi32>
    %125 = arith.andi %59, %124 : vector<8x512xi32>
    %cst_47 = arith.constant dense<0> : vector<512xi32>
    %126 = vector.multi_reduction <add>, %125, %cst_47 [0] : vector<8x512xi32> to vector<512xi32>
    %127 = vector.shape_cast %126 : vector<512xi32> to vector<1x512xi32>
    %c16_i32_48 = arith.constant 16 : i32
    %128 = vector.broadcast %c16_i32_48 : i32 to vector<8x512xi32>
    %129 = arith.shrsi %59, %128 : vector<8x512xi32>
    %c255_i32_49 = arith.constant 255 : i32
    %130 = vector.broadcast %c255_i32_49 : i32 to vector<8x512xi32>
    %131 = arith.andi %129, %130 : vector<8x512xi32>
    %cst_50 = arith.constant dense<0> : vector<512xi32>
    %132 = vector.multi_reduction <add>, %131, %cst_50 [0] : vector<8x512xi32> to vector<512xi32>
    %133 = vector.shape_cast %132 : vector<512xi32> to vector<1x512xi32>
    %c8_i32_51 = arith.constant 8 : i32
    %134 = vector.broadcast %c8_i32_51 : i32 to vector<8x512xi32>
    %135 = arith.shrsi %59, %134 : vector<8x512xi32>
    %c255_i32_52 = arith.constant 255 : i32
    %136 = vector.broadcast %c255_i32_52 : i32 to vector<8x512xi32>
    %137 = arith.andi %135, %136 : vector<8x512xi32>
    %cst_53 = arith.constant dense<0> : vector<512xi32>
    %138 = vector.multi_reduction <add>, %137, %cst_53 [0] : vector<8x512xi32> to vector<512xi32>
    %139 = vector.shape_cast %138 : vector<512xi32> to vector<1x512xi32>
    %c24_i32_54 = arith.constant 24 : i32
    %140 = vector.broadcast %c24_i32_54 : i32 to vector<8x512xi32>
    %141 = arith.shrsi %59, %140 : vector<8x512xi32>
    %c255_i32_55 = arith.constant 255 : i32
    %142 = vector.broadcast %c255_i32_55 : i32 to vector<8x512xi32>
    %143 = arith.andi %141, %142 : vector<8x512xi32>
    %cst_56 = arith.constant dense<0> : vector<512xi32>
    %144 = vector.multi_reduction <add>, %143, %cst_56 [0] : vector<8x512xi32> to vector<512xi32>
    %145 = vector.shape_cast %144 : vector<512xi32> to vector<1x512xi32>
    %c255_i32_57 = arith.constant 255 : i32
    %146 = vector.broadcast %c255_i32_57 : i32 to vector<8x512xi32>
    %147 = arith.andi %69, %146 : vector<8x512xi32>
    %cst_58 = arith.constant dense<0> : vector<512xi32>
    %148 = vector.multi_reduction <add>, %147, %cst_58 [0] : vector<8x512xi32> to vector<512xi32>
    %149 = vector.shape_cast %148 : vector<512xi32> to vector<1x512xi32>
    %c16_i32_59 = arith.constant 16 : i32
    %150 = vector.broadcast %c16_i32_59 : i32 to vector<8x512xi32>
    %151 = arith.shrsi %69, %150 : vector<8x512xi32>
    %c255_i32_60 = arith.constant 255 : i32
    %152 = vector.broadcast %c255_i32_60 : i32 to vector<8x512xi32>
    %153 = arith.andi %151, %152 : vector<8x512xi32>
    %cst_61 = arith.constant dense<0> : vector<512xi32>
    %154 = vector.multi_reduction <add>, %153, %cst_61 [0] : vector<8x512xi32> to vector<512xi32>
    %155 = vector.shape_cast %154 : vector<512xi32> to vector<1x512xi32>
    %c8_i32_62 = arith.constant 8 : i32
    %156 = vector.broadcast %c8_i32_62 : i32 to vector<8x512xi32>
    %157 = arith.shrsi %69, %156 : vector<8x512xi32>
    %c255_i32_63 = arith.constant 255 : i32
    %158 = vector.broadcast %c255_i32_63 : i32 to vector<8x512xi32>
    %159 = arith.andi %157, %158 : vector<8x512xi32>
    %cst_64 = arith.constant dense<0> : vector<512xi32>
    %160 = vector.multi_reduction <add>, %159, %cst_64 [0] : vector<8x512xi32> to vector<512xi32>
    %161 = vector.shape_cast %160 : vector<512xi32> to vector<1x512xi32>
    %c24_i32_65 = arith.constant 24 : i32
    %162 = vector.broadcast %c24_i32_65 : i32 to vector<8x512xi32>
    %163 = arith.shrsi %69, %162 : vector<8x512xi32>
    %c255_i32_66 = arith.constant 255 : i32
    %164 = vector.broadcast %c255_i32_66 : i32 to vector<8x512xi32>
    %165 = arith.andi %163, %164 : vector<8x512xi32>
    %cst_67 = arith.constant dense<0> : vector<512xi32>
    %166 = vector.multi_reduction <add>, %165, %cst_67 [0] : vector<8x512xi32> to vector<512xi32>
    %167 = vector.shape_cast %166 : vector<512xi32> to vector<1x512xi32>
    %c255_i32_68 = arith.constant 255 : i32
    %168 = vector.broadcast %c255_i32_68 : i32 to vector<8x512xi32>
    %169 = arith.andi %79, %168 : vector<8x512xi32>
    %cst_69 = arith.constant dense<0> : vector<512xi32>
    %170 = vector.multi_reduction <add>, %169, %cst_69 [0] : vector<8x512xi32> to vector<512xi32>
    %171 = vector.shape_cast %170 : vector<512xi32> to vector<1x512xi32>
    %c16_i32_70 = arith.constant 16 : i32
    %172 = vector.broadcast %c16_i32_70 : i32 to vector<8x512xi32>
    %173 = arith.shrsi %79, %172 : vector<8x512xi32>
    %c255_i32_71 = arith.constant 255 : i32
    %174 = vector.broadcast %c255_i32_71 : i32 to vector<8x512xi32>
    %175 = arith.andi %173, %174 : vector<8x512xi32>
    %cst_72 = arith.constant dense<0> : vector<512xi32>
    %176 = vector.multi_reduction <add>, %175, %cst_72 [0] : vector<8x512xi32> to vector<512xi32>
    %177 = vector.shape_cast %176 : vector<512xi32> to vector<1x512xi32>
    %c8_i32_73 = arith.constant 8 : i32
    %178 = vector.broadcast %c8_i32_73 : i32 to vector<8x512xi32>
    %179 = arith.shrsi %79, %178 : vector<8x512xi32>
    %c255_i32_74 = arith.constant 255 : i32
    %180 = vector.broadcast %c255_i32_74 : i32 to vector<8x512xi32>
    %181 = arith.andi %179, %180 : vector<8x512xi32>
    %cst_75 = arith.constant dense<0> : vector<512xi32>
    %182 = vector.multi_reduction <add>, %181, %cst_75 [0] : vector<8x512xi32> to vector<512xi32>
    %183 = vector.shape_cast %182 : vector<512xi32> to vector<1x512xi32>
    %c24_i32_76 = arith.constant 24 : i32
    %184 = vector.broadcast %c24_i32_76 : i32 to vector<8x512xi32>
    %185 = arith.shrsi %79, %184 : vector<8x512xi32>
    %c255_i32_77 = arith.constant 255 : i32
    %186 = vector.broadcast %c255_i32_77 : i32 to vector<8x512xi32>
    %187 = arith.andi %185, %186 : vector<8x512xi32>
    %cst_78 = arith.constant dense<0> : vector<512xi32>
    %188 = vector.multi_reduction <add>, %187, %cst_78 [0] : vector<8x512xi32> to vector<512xi32>
    %189 = vector.shape_cast %188 : vector<512xi32> to vector<1x512xi32>
    %c0_i32_79 = arith.constant 0 : i32
    %190 = vector.broadcast %c0_i32_79 : i32 to vector<4x512xi32>
    %191 = tpu.concatenate %83, %89, %105, %111, %127, %133, %149, %155, %171, %177, %95, %101, %117, %123, %139, %145 in 0 : vector<1x512xi32>, vector<1x512xi32>, vector<1x512xi32>, vector<1x512xi32>, vector<1x512xi32>, vector<1x512xi32>, vector<1x512xi32>, vector<1x512xi32>, vector<1x512xi32>, vector<1x512xi32>, vector<1x512xi32>, vector<1x512xi32>, vector<1x512xi32>, vector<1x512xi32>, vector<1x512xi32>, vector<1x512xi32> -> vector<16x512xi32>
    %192 = tpu.concatenate %161, %167, %183, %189, %190 in 0 : vector<1x512xi32>, vector<1x512xi32>, vector<1x512xi32>, vector<1x512xi32>, vector<4x512xi32> -> vector<8x512xi32>
    %193 = tpu.concatenate %191, %192 in 0 : vector<16x512xi32>, vector<8x512xi32> -> vector<24x512xi32>
    %c0_80 = arith.constant 0 : index
    %c0_81 = arith.constant 0 : index
    %c0_82 = arith.constant 0 : index
    %194 = vector.load %arg4[%c0_80, %c0_81, %c0_82] : memref<1x24x512xi32, #tpu.memory_space<vmem>>, vector<1x24x512xi32>
    %195 = vector.shape_cast %194 : vector<1x24x512xi32> to vector<24x512xi32>
    %196 = arith.addi %195, %193 : vector<24x512xi32>
    %c0_83 = arith.constant 0 : index
    %c0_84 = arith.constant 0 : index
    %c0_85 = arith.constant 0 : index
    %197 = vector.load %arg4[%c0_83, %c0_84, %c0_85] : memref<1x24x512xi32, #tpu.memory_space<vmem>>, vector<1x24x512xi32>
    %198 = vector.shape_cast %197 : vector<1x24x512xi32> to vector<24x512xi32>
    %199 = vector.shape_cast %196 : vector<24x512xi32> to vector<1x24x512xi32>
    tpu.vector_store %arg4[%c0_83, %c0_84, %c0_85], %199 {strides = array<i32>} : memref<1x24x512xi32, #tpu.memory_space<vmem>>, vector<1x24x512xi32>,
    return
  }
  func.func @transform_0(%arg0: i32, %arg1: i32) -> (i32, i32) {
    %c1_i32 = arith.constant 1 : i32
    %0 = arith.muli %arg0, %c1_i32 : i32
    %1 = arith.addi %0, %arg1 : i32
    %c0_i32 = arith.constant 0 : i32
    %2 = arith.minsi %1, %c0_i32 : i32
    %c0_i32_0 = arith.constant 0 : i32
    %c0_i32_1 = arith.constant 0 : i32
    return %2, %c0_i32_0 : i32, i32
  }
  func.func @transform_1(%arg0: i32, %arg1: i32) -> (i32, i32) {
    %c1_i32 = arith.constant 1 : i32
    %0 = arith.muli %arg0, %c1_i32 : i32
    %1 = arith.addi %0, %arg1 : i32
    %c0_i32 = arith.constant 0 : i32
    %2 = arith.minsi %1, %c0_i32 : i32
    %c0_i32_0 = arith.constant 0 : i32
    %c0_i32_1 = arith.constant 0 : i32
    return %2, %c0_i32_0 : i32, i32
  }
  func.func @transform_2(%arg0: i32, %arg1: i32) -> (i32, i32, i32) {
    %c0_i32 = arith.constant 0 : i32
    %c0_i32_0 = arith.constant 0 : i32
    %c0_i32_1 = arith.constant 0 : i32
    return %arg0, %c0_i32, %c0_i32_0 : i32, i32, i32
  }
}

</mosaic_0001>

<bundles_post_ra>
// kernel: count_res_histograms.1
= control target key start
LH: loop header
LB: loop body
LE: loop exit
PB: predicated region body
PF: predicated region fallthrough
CT: control target
= control target key end

     0   :  { %s1568_s9 = smov 0   ;;  %s1570_s10 = smov 0   ;;  %s2124_s0 = inlined_call_operand.vmem [shape: f32[1,512], index: 0, kind: input, shape index: {}]   ;;  %s2125_s1 = inlined_call_operand.vmem [shape: f32[1,512], index: 1, kind: input, shape index: {}]   ;;  %s2126_s2 = inlined_call_operand.vmem [shape: s32[2,24,512], index: 2, kind: output, shape index: {}]  }
   0x1   :  { %s1572_s11 = smov 0  }
   0x2 LB: > { %s24_s12 = sadd.s32 1, %s1545_s10  ;;  %p1454_p0 = scmp.ge.s32.totalorder %s1549_s11, 1  ;;  %s1549_s11 = sphi %s1572_s11, %s12_s11   ;;  %s1545_s10 = sphi %s1570_s10, %s2130_s10   ;;  %s1541_s9 = sphi %s1568_s9, %s2129_s9  }
   0x3   : > { %p26_p1 = scmp.ge.s32.totalorder %s24_s12, 2  ;;  %p172_p2 = scmp.lt.s32.totalorder %s1549_s11, 3 }
   0x5   : > { %s2132_s12 = smov (%p26_p1, %s24_s12), 0  ;;  %p173_p3 = pnand %p1454_p0, %p172_p2 }
   0x6   : > { %p212_p4 = scmp.lt.s32.totalorder (!%p173_p3), %s1541_s9, 0  ;;  %v270_v0 = vlaneseq (!%p173_p3)  ;;  %v1551_v1 = vmov (!%p173_p3), 1966171168   ;;  %s1460_s16 = sshll.u32 (!%p173_p3), %s1541_s9, 3  ;;  %v1552_v57 = vmov (!%p173_p3), 1  }
   0x7   : > { %176 = sbr.rel (%p173_p3) target bundleno = 258 (0x102), region = 28  ;;  %v313_v2 = vunpack.c.l.s4 (!%p173_p3), %v1551_v1  ;;  %s1594_s20 = ssub.s32 (!%p173_p3), 1, %s1460_s16 }
   0x8   : > { %v271_v3 = vshrl.u32 (!%p173_p3), %v270_v0, 7  ;;  %v306_v13 = vstv (!%p173_p3), %s1594_s20  ;;  %p247_p6 = scmp.lt.s32.totalorder (!%p173_p3), %s1541_s9, 1 }
   0x9   : > { %v314_v4 = vunpack.c.0.s8 (!%p173_p3), %v313_v2 }
   0xa   : > { %vm1612_vm0 = vcmp.lt.s32.totalorder (!%p173_p3), %v271_v3, %v306_v13 }
   0xb   : > { %v1597_v14 = vsub.s32 (!%p173_p3), %v314_v4, %v271_v3 }
   0xe   : > { %s213_s13 = scalar_select %p212_p4, %s1541_s9, 0 }
   0xf   : > { %s2136_s9 = smov (!%p247_p6, %s1541_s9), 1 }
  0x10   : > { %s1455_s14 = sshll.u32 %s213_s13, 3  ;;  %s1483_s24 = smul.u32 96, %s2136_s9 }
  0x11   : > { %p218_p5 = scmp.lt.s32.totalorder %s1455_s14, 0 }
  0x12   : > { %s1801_s27 = scalar_lea.vmem %s2126_s2, %s1483_s24 }
  0x13   : > { %s2134_s14 = smov (!%p218_p5, %s1455_s14), 0 }
  0x14   : > { %s1456_s15 = sshll.u32 %s2134_s14, 2 }
  0x15   : > { %s221_s19 = scalar_lea.vmem %s2124_s0, %s1456_s15  ;;  %s1602_s23 = scalar_lea.vmem %s2125_s1, %s1456_s15 }
  0x16   : > { %v272_v5 = vld [vmem:[%s221_s19] sm:$0xf]  ;;  %v273_v6 = vld [vmem:[%s221_s19 + $0x4] sm:$0xf]  ;;  %v274_v7 = vld [vmem:[%s221_s19 + $0x8] sm:$0xf] }
  0x17   : > { %v275_v8 = vld [vmem:[%s221_s19 + $0xc] sm:$0xf]  ;;  %v276_v9 = vld [vmem:[%s221_s19 + $0x10] sm:$0xf]  ;;  %v277_v10 = vld [vmem:[%s221_s19 + $0x14] sm:$0xf] }
  0x18   : > { %v278_v11 = vld [vmem:[%s221_s19 + $0x18] sm:$0xf]  ;;  %v279_v12 = vld [vmem:[%s221_s19 + $0x1c] sm:$0xf]  ;;  %v289_v15 = vmul.f32 10.0, %v272_v5  ;;  %v290_v16 = vmul.f32 10.0, %v273_v6 }
  0x19   : > { %v291_v17 = vmul.f32 10.0, %v274_v7  ;;  %v292_v18 = vmul.f32 10.0, %v275_v8  ;;  %v293_v19 = vmul.f32 10.0, %v276_v9  ;;  %v294_v20 = vmul.f32 10.0, %v277_v10  ;;  %v280_v27 = vld [vmem:[%s1602_s23] sm:$0xf] }
  0x1a   : > { %v295_v21 = vmul.f32 10.0, %v278_v11  ;;  %v296_v22 = vmul.f32 10.0, %v279_v12  ;;  %v1484_v23 = vtrunc.f32 %v289_v15  ;;  %v1486_v24 = vtrunc.f32 %v290_v16  ;;  %v281_v28 = vld [vmem:[%s1602_s23 + $0x4] sm:$0xf]  ;;  %v282_v33 = vld [vmem:[%s1602_s23 + $0x8] sm:$0xf] }
  0x1b   : > { %v1488_v25 = vtrunc.f32 %v291_v17  ;;  %v1490_v26 = vtrunc.f32 %v292_v18  ;;  %v1492_v29 = vtrunc.f32 %v293_v19  ;;  %v1494_v30 = vtrunc.f32 %v294_v20  ;;  %v283_v34 = vld [vmem:[%s1602_s23 + $0xc] sm:$0xf]  ;;  %v284_v39 = vld [vmem:[%s1602_s23 + $0x10] sm:$0xf]  ;;  %v285_v40 = vld [vmem:[%s1602_s23 + $0x14] sm:$0xf] }
  0x1c   : > { %v1496_v31 = vtrunc.f32 %v295_v21  ;;  %v1498_v32 = vtrunc.f32 %v296_v22  ;;  %v1485_v35 = vcvt.f32.s32 %v1484_v23  ;;  %v1487_v36 = vcvt.f32.s32 %v1486_v24  ;;  %v286_v45 = vld [vmem:[%s1602_s23 + $0x18] sm:$0xf]  ;;  %v287_v46 = vld [vmem:[%s1602_s23 + $0x1c] sm:$0xf] }
  0x1d   : > { %v1489_v37 = vcvt.f32.s32 %v1488_v25  ;;  %v1491_v38 = vcvt.f32.s32 %v1490_v26  ;;  %v1493_v41 = vcvt.f32.s32 %v1492_v29  ;;  %v1495_v42 = vcvt.f32.s32 %v1494_v30 }
  0x1e   : > { %v1497_v43 = vcvt.f32.s32 %v1496_v31  ;;  %v1499_v44 = vcvt.f32.s32 %v1498_v32  ;;  %v308_v48 = vcombine.low %v1485_v35, %v1487_v36  ;;  %vm380_vm1 = vcmp.gt.f32.partialorder %v280_v27, 0.5 }
  0x1f   : > { %v309_v49 = vcombine.low %v1489_v37, %v1491_v38  ;;  %vm381_vm2 = vcmp.gt.f32.partialorder %v281_v28, 0.5  ;;  %v310_v50 = vcombine.low %v1493_v41, %v1495_v42  ;;  %vm382_vm3 = vcmp.gt.f32.partialorder %v282_v33, 0.5 }
  0x20   : > { %v311_v51 = vcombine.low %v1497_v43, %v1499_v44  ;;  %vm383_vm4 = vcmp.gt.f32.partialorder %v283_v34, 0.5  ;;  %v1617_v52 = vrot.slane %v308_v48, %v1597_v14  ;;  %vm384_vm5 = vcmp.gt.f32.partialorder %v284_v39, 0.5 }
  0x21   : > { %v1620_v53 = vrot.slane %v309_v49, %v1597_v14  ;;  %vm385_vm6 = vcmp.gt.f32.partialorder %v285_v40, 0.5  ;;  %v1623_v54 = vrot.slane %v310_v50, %v1597_v14  ;;  %vm386_vm7 = vcmp.gt.f32.partialorder %v286_v45, 0.5 }
  0x22   : > { %v1626_v55 = vrot.slane %v311_v51, %v1597_v14  ;;  %vm387_vm8 = vcmp.gt.f32.partialorder %v287_v46, 0.5  ;;  %v388_v58 = vsel %vm380_vm1, 256, %v1552_v57  ;;  %v389_v59 = vsel %vm381_vm2, 256, %v1552_v57 }
  0x23   : > { %v340_v56 = vcombine.low %v1617_v52, %v1620_v53  ;;  %v390_v60 = vsel %vm382_vm3, 256, %v1552_v57  ;;  %v391_v62 = vsel %vm383_vm4, 256, %v1552_v57  ;;  %v392_v63 = vsel %vm384_vm5, 256, %v1552_v57 }
  0x24   : > { %v342_v61 = vcombine.low %v1623_v54, %v1626_v55  ;;  %v393_v0 = vsel %vm385_vm6, 256, %v1552_v57  ;;  %v394_v2 = vsel %vm386_vm7, 256, %v1552_v57  ;;  %v395_v3 = vsel %vm387_vm8, 256, %v1552_v57 }
  0x25   : > { %v1635_v1 = vrot.slane %v340_v56, %v1597_v14  ;;  %v396_v4 = vshll.u32 %v388_v58, 16  ;;  %v397_v6 = vshll.u32 %v389_v59, 16  ;;  %v398_v7 = vshll.u32 %v390_v60, 16 }
  0x26   : > { %v1638_v5 = vrot.slane %v342_v61, %v1597_v14  ;;  %v399_v8 = vshll.u32 %v391_v62, 16  ;;  %v400_v9 = vshll.u32 %v392_v63, 16  ;;  %v401_v10 = vshll.u32 %v393_v0, 16 }
  0x27   : > { %v402_v11 = vshll.u32 %v394_v2, 16  ;;  %v403_v12 = vshll.u32 %v395_v3, 16  ;;  %v408_v15 = vcombine.low %v388_v58, %v389_v59  ;;  %v409_v16 = vcombine.low %v390_v60, %v391_v62 }
  0x28   : > { %v372_v13 = vcombine.low %v1635_v1, %v1638_v5  ;;  %v410_v17 = vcombine.low %v392_v63, %v393_v0  ;;  %v411_v18 = vcombine.low %v394_v2, %v395_v3  ;;  %v484_v19 = vcombine.low %v396_v4, %v397_v6 }
  0x29   : > { %v485_v20 = vcombine.low %v398_v7, %v399_v8  ;;  %v486_v21 = vcombine.low %v400_v9, %v401_v10  ;;  %v418_v23 = vrot.slane %v408_v15, %v1597_v14  ;;  %v425_v24 = vrot.slane %v409_v16, %v1597_v14 }
  0x2a   : > { %v1644_v22 = vsel %vm1612_vm0, %v372_v13, 4294967295  ;;  %v432_v25 = vrot.slane %v410_v17, %v1597_v14  ;;  %v439_v26 = vrot.slane %v411_v18, %v1597_v14  ;;  %v487_v27 = vcombine.low %v402_v11, %v403_v12 }
  0x2b   : > { %vm404_vm9 = vcmp.eq.s32.totalorder %v1644_v22, 0  ;;  %vm480_vm10 = vcmp.eq.s32.totalorder %v1644_v22, 1  ;;  %v440_v28 = vcombine.low %v418_v23, %v425_v24  ;;  %v494_v29 = vrot.slane %v484_v19, %v1597_v14 }
  0x2c   : > { %v501_v30 = vrot.slane %v485_v20, %v1597_v14  ;;  %v508_v31 = vrot.slane %v486_v21, %v1597_v14  ;;  %v442_v32 = vcombine.low %v432_v25, %v439_v26  ;;  %v515_v33 = vrot.slane %v487_v27, %v1597_v14 }
  0x2d   : > { %vm560_vm11 = vcmp.eq.s32.totalorder %v1644_v22, 2  ;;  %vm568_vm12 = vcmp.eq.s32.totalorder %v1644_v22, 3  ;;  %v1659_v34 = vrot.slane %v440_v28, %v1597_v14  ;;  %vm580_vm13 = vcmp.eq.s32.totalorder %v1644_v22, 4 }
  0x2e   : > { %v516_v35 = vcombine.low %v494_v29, %v501_v30  ;;  %vm588_vm14 = vcmp.eq.s32.totalorder %v1644_v22, 5  ;;  %v1664_v36 = vrot.slane %v442_v32, %v1597_v14  ;;  %v518_v37 = vcombine.low %v508_v31, %v515_v33 }
  0x2f   : > { %vm600_vm15 = vcmp.eq.s32.totalorder %v1644_v22, 6  ;;  %vm608_vm1 = vcmp.eq.s32.totalorder %v1644_v22, 7  ;;  %v341_v39 = vcombine.high %v1617_v52, %v1620_v53  ;;  %v343_v40 = vcombine.high %v1623_v54, %v1626_v55 }
  0x30   : > { %v1669_v38 = vrot.slane %v516_v35, %v1597_v14  ;;  %v441_v41 = vcombine.high %v418_v23, %v425_v24  ;;  %v1677_v42 = vcombine.low %v1659_v34, %v1664_v36  ;;  %v1680_v43 = vrot.slane %v518_v37, %v1597_v14 }
  0x31   : > { %v443_v44 = vcombine.high %v432_v25, %v439_v26  ;;  %v517_v45 = vcombine.high %v494_v29, %v501_v30  ;;  %v1683_v46 = vrot.slane %v341_v39, %v1597_v14  ;;  %v1686_v48 = vrot.slane %v343_v40, %v1597_v14 }
  0x32   : > { %v1689_v49 = vrot.slane %v441_v41, %v1597_v14  ;;  %v519_v50 = vcombine.high %v508_v31, %v515_v33  ;;  %v476_v51 = vsel %vm404_vm9, %v1677_v42, 0  ;;  %v1696_v52 = vcombine.low %v1669_v38, %v1680_v43 }
  0x33   : > { %v564_v53 = vsel %vm560_vm11, %v1677_v42, 0  ;;  %v584_v54 = vsel %vm580_vm13, %v1677_v42, 0  ;;  %v604_v55 = vsel %vm600_vm15, %v1677_v42, 0  ;;  %v374_v56 = vcombine.low %v1683_v46, %v1686_v48 }
  0x34   : > { %v1710_v57 = vrot.slane %v443_v44, %v1597_v14  ;;  %v1713_v58 = vrot.slane %v517_v45, %v1597_v14  ;;  %v552_v59 = vsel %vm480_vm10, %v1696_v52, 0  ;;  %v572_v60 = vsel %vm568_vm12, %v1696_v52, 0 }
  0x35   : > { %v592_v61 = vsel %vm588_vm14, %v1696_v52, 0  ;;  %v612_v62 = vsel %vm608_vm1, %v1696_v52, 0  ;;  %v1727_v63 = vadd.s32 %v552_v59, %v476_v51  ;;  %v1729_v0 = vadd.s32 %v572_v60, %v564_v53 }
  0x36   : > { %v1731_v2 = vadd.s32 %v592_v61, %v584_v54  ;;  %v1733_v3 = vadd.s32 %v612_v62, %v604_v55  ;;  %v1737_v4 = vsel %vm1612_vm0, %v374_v56, 4294967295  ;;  %v1741_v6 = vcombine.low %v1689_v49, %v1710_v57 }
  0x37   : > { %v1744_v7 = vrot.slane %v519_v50, %v1597_v14  ;;  %v373_v8 = vcombine.high %v1635_v1, %v1638_v5  ;;  %v640_v9 = vand.u32 255, %v1727_v63  ;;  %v668_v10 = vshra.s32 %v1727_v63, 16 }
  0x38   : > { %v764_v11 = vand.u32 255, %v1729_v0  ;;  %v792_v12 = vshra.s32 %v1729_v0, 16  ;;  %v888_v13 = vand.u32 255, %v1731_v2  ;;  %v916_v15 = vshra.s32 %v1731_v2, 16 }
  0x39   : > { %v1012_v16 = vand.u32 255, %v1733_v3  ;;  %v1040_v14 = vshra.s32 %v1733_v3, 16  ;;  %v644_v17 = vrot.slane %v640_v9, 4  ;;  %v672_v18 = vand.u32 255, %v668_v10 }
  0x3a   : > { %v768_v19 = vrot.slane %v764_v11, 4  ;;  %v796_v20 = vand.u32 255, %v792_v12  ;;  %v892_v21 = vrot.slane %v888_v13, 4  ;;  %v920_v23 = vand.u32 255, %v916_v15 }
  0x3b   : > { %v1016_v24 = vrot.slane %v1012_v16, 4  ;;  %v1044_v25 = vand.u32 255, %v1040_v14  ;;  %v645_v26 = vadd.s32 %v644_v17, %v640_v9  ;;  %v676_v27 = vrot.slane %v672_v18, 4 }
  0x3c   : > { %v769_v28 = vadd.s32 %v768_v19, %v764_v11  ;;  %v800_v29 = vrot.slane %v796_v20, 4  ;;  %v893_v30 = vadd.s32 %v892_v21, %v888_v13  ;;  %v924_v31 = vrot.slane %v920_v23, 4 }
  0x3d   : > { %v1017_v32 = vadd.s32 %v1016_v24, %v1012_v16  ;;  %v1048_v33 = vrot.slane %v1044_v25, 4  ;;  %vm1260_vm2 = vcmask 1040384   ;;  %v646_v35 = vrot.slane %v645_v26, 2 }
  0x3e   : > { %v677_v37 = vadd.s32 %v676_v27, %v672_v18  ;;  %v770_v39 = vrot.slane %v769_v28, 2  ;;  %v801_v40 = vadd.s32 %v800_v29, %v796_v20  ;;  %vm1265_vm3 = vcmask 1041408  }
  0x3f   : > { %v894_v41 = vrot.slane %v893_v30, 2  ;;  %v925_v44 = vadd.s32 %v924_v31, %v920_v23  ;;  %v1018_v45 = vrot.slane %v1017_v32, 2  ;;  %v1049_v50 = vadd.s32 %v1048_v33, %v1044_v25 }
  0x40   : > { %vm1270_vm4 = vcmask 1042432   ;;  %v647_v51 = vadd.s32 %v646_v35, %v645_v26  ;;  %v678_v53 = vrot.slane %v677_v37, 2  ;;  %v771_v54 = vadd.s32 %v770_v39, %v769_v28 }
  0x41   : > { %v802_v55 = vrot.slane %v801_v40, 2  ;;  %vm1275_vm5 = vcmask 1043456   ;;  %v895_v56 = vadd.s32 %v894_v41, %v893_v30  ;;  %v926_v59 = vrot.slane %v925_v44, 2 }
  0x42   : > { %v1019_v60 = vadd.s32 %v1018_v45, %v1017_v32  ;;  %v1050_v61 = vrot.slane %v1049_v50, 2  ;;  %vm1280_vm6 = vcmask 1044480   ;;  %v648_v62 = vrot.slane %v647_v51, 1 }
  0x43   : > { %v679_v9 = vadd.s32 %v678_v53, %v677_v37  ;;  %v772_v10 = vrot.slane %v771_v54, 1  ;;  %v803_v11 = vadd.s32 %v802_v55, %v801_v40  ;;  %vm1285_vm7 = vcmask 1045504  }
  0x44   : > { %v896_v12 = vrot.slane %v895_v56, 1  ;;  %v927_v13 = vadd.s32 %v926_v59, %v925_v44  ;;  %v1020_v15 = vrot.slane %v1019_v60, 1  ;;  %v1051_v16 = vadd.s32 %v1050_v61, %v1049_v50 }
  0x45   : > { %vm1290_vm8 = vcmask 1046528   ;;  %v649_v14 = vadd.s32 %v648_v62, %v647_v51  ;;  %v680_v17 = vrot.slane %v679_v9, 1  ;;  %v773_v18 = vadd.s32 %v772_v10, %v771_v54 }
  0x46   : > { %v804_v19 = vrot.slane %v803_v11, 1  ;;  %v897_v20 = vadd.s32 %v896_v12, %v895_v56  ;;  %v928_v21 = vrot.slane %v927_v13, 1  ;;  %v1021_v23 = vadd.s32 %v1020_v15, %v1019_v60 }
  0x47   : > { %v1052_v24 = vrot.slane %v1051_v16, 1  ;;  %v681_v25 = vadd.s32 %v680_v17, %v679_v9  ;;  %vm405_vm9 = vcmp.eq.s32.totalorder %v1737_v4, 0  ;;  %vm481_vm10 = vcmp.eq.s32.totalorder %v1737_v4, 1 }
  0x48   : > { %v805_v26 = vadd.s32 %v804_v19, %v803_v11  ;;  %v929_v27 = vadd.s32 %v928_v21, %v927_v13  ;;  %v477_v29 = vsel %vm405_vm9, %v1741_v6, 0  ;;  %v1767_v30 = vcombine.low %v1713_v58, %v1744_v7 }
  0x49   : > { %v1053_v28 = vadd.s32 %v1052_v24, %v1051_v16  ;;  %v1261_v31 = vsel %vm1260_vm2, %v649_v14, %v681_v25  ;;  %vm561_vm11 = vcmp.eq.s32.totalorder %v1737_v4, 2  ;;  %vm569_vm12 = vcmp.eq.s32.totalorder %v1737_v4, 3 }
  0x4a   : > { %vm581_vm13 = vcmp.eq.s32.totalorder %v1737_v4, 4  ;;  %v1266_v32 = vsel %vm1265_vm3, %v1261_v31, %v773_v18  ;;  %v553_v33 = vsel %vm481_vm10, %v1767_v30, 0  ;;  %v565_v35 = vsel %vm561_vm11, %v1741_v6, 0 }
  0x4b   : > { %v573_v37 = vsel %vm569_vm12, %v1767_v30, 0  ;;  %v1271_v39 = vsel %vm1270_vm4, %v1266_v32, %v805_v26  ;;  %v1779_v40 = vadd.s32 %v553_v33, %v477_v29  ;;  %v585_v44 = vsel %vm581_vm13, %v1741_v6, 0 }
  0x4c   : > { %v1781_v41 = vadd.s32 %v573_v37, %v565_v35  ;;  %v1276_v45 = vsel %vm1275_vm5, %v1271_v39, %v897_v20  ;;  %vm589_vm14 = vcmp.eq.s32.totalorder %v1737_v4, 5  ;;  %vm601_vm15 = vcmp.eq.s32.totalorder %v1737_v4, 6 }
  0x4d   : > { %vm609_vm1 = vcmp.eq.s32.totalorder %v1737_v4, 7  ;;  %v1281_v50 = vsel %vm1280_vm6, %v1276_v45, %v929_v27  ;;  %v593_v51 = vsel %vm589_vm14, %v1767_v30, 0  ;;  %v605_v53 = vsel %vm601_vm15, %v1741_v6, 0 }
  0x4e   : > { %v613_v54 = vsel %vm609_vm1, %v1767_v30, 0  ;;  %v1286_v55 = vsel %vm1285_vm7, %v1281_v50, %v1021_v23  ;;  %v1793_v56 = vadd.s32 %v593_v51, %v585_v44  ;;  %v641_v60 = vand.u32 255, %v1779_v40 }
  0x4f   : > { %v1795_v59 = vadd.s32 %v613_v54, %v605_v53  ;;  %v1291_v61 = vsel %vm1290_vm8, %v1286_v55, %v1053_v28  ;;  %v669_v62 = vshra.s32 %v1779_v40, 16  ;;  %v765_v9 = vand.u32 255, %v1781_v41 }
  0x50   : > { %v793_v10 = vshra.s32 %v1781_v41, 16  ;;  %v650_v11 = vrot.slane %v641_v60, 4  ;;  %v889_v12 = vand.u32 255, %v1793_v56  ;;  %v917_v13 = vshra.s32 %v1793_v56, 16  ;;  %1363 = vst [vmem:[%s1801_s27] sm:$0xff] %v1291_v61 }
  0x51   : > { %v673_v15 = vand.u32 255, %v669_v62  ;;  %v774_v16 = vrot.slane %v765_v9, 4  ;;  %v1013_v17 = vand.u32 255, %v1795_v59  ;;  %v1041_v21 = vshra.s32 %v1795_v59, 16 }
  0x52   : > { %v797_v14 = vand.u32 255, %v793_v10  ;;  %v651_v18 = vadd.s32 %v650_v11, %v641_v60  ;;  %v898_v19 = vrot.slane %v889_v12, 4  ;;  %v921_v20 = vand.u32 255, %v917_v13 }
  0x53   : > { %v682_v23 = vrot.slane %v673_v15, 4  ;;  %v775_v24 = vadd.s32 %v774_v16, %v765_v9  ;;  %v1022_v26 = vrot.slane %v1013_v17, 4  ;;  %v1045_v31 = vand.u32 255, %v1041_v21 }
  0x54   : > { %v806_v25 = vrot.slane %v797_v14, 4  ;;  %v652_v27 = vrot.slane %v651_v18, 2  ;;  %v899_v28 = vadd.s32 %v898_v19, %v889_v12  ;;  %v930_v29 = vrot.slane %v921_v20, 4 }
  0x55   : > { %v683_v32 = vadd.s32 %v682_v23, %v673_v15  ;;  %v776_v33 = vrot.slane %v775_v24, 2  ;;  %v1023_v37 = vadd.s32 %v1022_v26, %v1013_v17  ;;  %v1054_v50 = vrot.slane %v1045_v31, 4 }
  0x56   : > { %v807_v35 = vadd.s32 %v806_v25, %v797_v14  ;;  %v653_v39 = vadd.s32 %v652_v27, %v651_v18  ;;  %v900_v44 = vrot.slane %v899_v28, 2  ;;  %v931_v45 = vadd.s32 %v930_v29, %v921_v20 }
  0x57   : > { %v684_v51 = vrot.slane %v683_v32, 2  ;;  %v777_v53 = vadd.s32 %v776_v33, %v775_v24  ;;  %v1024_v55 = vrot.slane %v1023_v37, 2  ;;  %v1055_v9 = vadd.s32 %v1054_v50, %v1045_v31 }
  0x58   : > { %v808_v54 = vrot.slane %v807_v35, 2  ;;  %v654_v60 = vrot.slane %v653_v39, 1  ;;  %v901_v61 = vadd.s32 %v900_v44, %v899_v28  ;;  %v932_v62 = vrot.slane %v931_v45, 2 }
  0x59   : > { %v685_v10 = vadd.s32 %v684_v51, %v683_v32  ;;  %v778_v11 = vrot.slane %v777_v53, 1  ;;  %v1025_v13 = vadd.s32 %v1024_v55, %v1023_v37  ;;  %v1056_v17 = vrot.slane %v1055_v9, 2 }
  0x5a   : > { %v809_v12 = vadd.s32 %v808_v54, %v807_v35  ;;  %v655_v15 = vadd.s32 %v654_v60, %v653_v39  ;;  %v902_v16 = vrot.slane %v901_v61, 1  ;;  %v933_v14 = vadd.s32 %v932_v62, %v931_v45 }
  0x5b   : > { %v686_v18 = vrot.slane %v685_v10, 1  ;;  %v779_v19 = vadd.s32 %v778_v11, %v777_v53  ;;  %v1026_v21 = vrot.slane %v1025_v13, 1  ;;  %v1057_v25 = vadd.s32 %v1056_v17, %v1055_v9 }
  0x5c   : > { %v810_v20 = vrot.slane %v809_v12, 1  ;;  %v903_v23 = vadd.s32 %v902_v16, %v901_v61  ;;  %v934_v24 = vrot.slane %v933_v14, 1  ;;  %v1817_v26 = vsel %vm1612_vm0, %v373_v8, 4294967295 }
  0x5d   : > { %v687_v27 = vadd.s32 %v686_v18, %v685_v10  ;;  %v1027_v29 = vadd.s32 %v1026_v21, %v1025_v13  ;;  %vm406_vm9 = vcmp.eq.s32.totalorder %v1817_v26, 0  ;;  %v1058_v32 = vrot.slane %v1057_v25, 1 }
  0x5e   : > { %v811_v28 = vadd.s32 %v810_v20, %v809_v12  ;;  %v935_v31 = vadd.s32 %v934_v24, %v933_v14  ;;  %v1822_v33 = vcombine.high %v1659_v34, %v1664_v36  ;;  %vm482_vm10 = vcmp.eq.s32.totalorder %v1817_v26, 1 }
  0x5f   : > { %v1262_v35 = vsel %vm1260_vm2, %v655_v15, %v687_v27  ;;  %v1828_v1 = vcombine.high %v1669_v38, %v1680_v43  ;;  %vm562_vm11 = vcmp.eq.s32.totalorder %v1817_v26, 2  ;;  %vm570_vm12 = vcmp.eq.s32.totalorder %v1817_v26, 3 }
  0x60   : > { %v1059_v5 = vadd.s32 %v1058_v32, %v1057_v25  ;;  %v1267_v8 = vsel %vm1265_vm3, %v1262_v35, %v779_v19  ;;  %v478_v37 = vsel %vm406_vm9, %v1822_v33, 0  ;;  %v566_v34 = vsel %vm562_vm11, %v1822_v33, 0 }
  0x61   : > { %v1272_v36 = vsel %vm1270_vm4, %v1267_v8, %v811_v28  ;;  %v554_v39 = vsel %vm482_vm10, %v1828_v1, 0  ;;  %v574_v44 = vsel %vm570_vm12, %v1828_v1, 0  ;;  %vm582_vm13 = vcmp.eq.s32.totalorder %v1817_v26, 4 }
  0x62   : > { %v1277_v38 = vsel %vm1275_vm5, %v1272_v36, %v903_v23  ;;  %v1840_v43 = vadd.s32 %v554_v39, %v478_v37  ;;  %v1842_v45 = vadd.s32 %v574_v44, %v566_v34  ;;  %v586_v50 = vsel %vm582_vm13, %v1822_v33, 0 }
  0x63   : > { %v1282_v51 = vsel %vm1280_vm6, %v1277_v38, %v935_v31  ;;  %vm590_vm14 = vcmp.eq.s32.totalorder %v1817_v26, 5  ;;  %vm602_vm15 = vcmp.eq.s32.totalorder %v1817_v26, 6  ;;  %vm610_vm1 = vcmp.eq.s32.totalorder %v1817_v26, 7 }
  0x64   : > { %v1287_v53 = vsel %vm1285_vm7, %v1282_v51, %v1027_v29  ;;  %v594_v54 = vsel %vm590_vm14, %v1828_v1, 0  ;;  %v606_v55 = vsel %vm602_vm15, %v1822_v33, 0  ;;  %v614_v60 = vsel %vm610_vm1, %v1828_v1, 0 }
  0x65   : > { %v1292_v61 = vsel %vm1290_vm8, %v1287_v53, %v1059_v5  ;;  %v1854_v62 = vadd.s32 %v594_v54, %v586_v50  ;;  %v1856_v9 = vadd.s32 %v614_v60, %v606_v55  ;;  %v642_v10 = vand.u32 255, %v1840_v43 }
  0x66   : > { %v670_v11 = vshra.s32 %v1840_v43, 16  ;;  %v766_v12 = vand.u32 255, %v1842_v45  ;;  %v794_v13 = vshra.s32 %v1842_v45, 16  ;;  %1364 = vst [vmem:[%s1801_s27 + $0x8] sm:$0xff] %v1292_v61  ;;  %vm620_vm1 = vcmp.eq.s32.totalorder %v1644_v22, 8 }
  0x67   : > { %v656_v15 = vrot.slane %v642_v10, 4  ;;  %v890_v16 = vand.u32 255, %v1854_v62  ;;  %v918_v14 = vshra.s32 %v1854_v62, 16  ;;  %v1014_v17 = vand.u32 255, %v1856_v9 }
  0x68   : > { %v674_v18 = vand.u32 255, %v670_v11  ;;  %v780_v19 = vrot.slane %v766_v12, 4  ;;  %v798_v20 = vand.u32 255, %v794_v13  ;;  %v1042_v21 = vshra.s32 %v1856_v9, 16 }
  0x69   : > { %v657_v23 = vadd.s32 %v656_v15, %v642_v10  ;;  %v904_v24 = vrot.slane %v890_v16, 4  ;;  %v922_v25 = vand.u32 255, %v918_v14  ;;  %v1028_v27 = vrot.slane %v1014_v17, 4 }
  0x6a   : > { %v688_v28 = vrot.slane %v674_v18, 4  ;;  %v781_v29 = vadd.s32 %v780_v19, %v766_v12  ;;  %v812_v31 = vrot.slane %v798_v20, 4  ;;  %v1046_v32 = vand.u32 255, %v1042_v21 }
  0x6b   : > { %v658_v35 = vrot.slane %v657_v23, 2  ;;  %v905_v5 = vadd.s32 %v904_v24, %v890_v16  ;;  %v936_v8 = vrot.slane %v922_v25, 4  ;;  %v1029_v37 = vadd.s32 %v1028_v27, %v1014_v17 }
  0x6c   : > { %v689_v34 = vadd.s32 %v688_v28, %v674_v18  ;;  %v782_v36 = vrot.slane %v781_v29, 2  ;;  %v813_v39 = vadd.s32 %v812_v31, %v798_v20  ;;  %v1060_v44 = vrot.slane %v1046_v32, 4 }
  0x6d   : > { %v659_v38 = vadd.s32 %v658_v35, %v657_v23  ;;  %v906_v50 = vrot.slane %v905_v5, 2  ;;  %v937_v51 = vadd.s32 %v936_v8, %v922_v25  ;;  %v1030_v53 = vrot.slane %v1029_v37, 2 }
  0x6e   : > { %v690_v54 = vrot.slane %v689_v34, 2  ;;  %v783_v55 = vadd.s32 %v782_v36, %v781_v29  ;;  %v814_v60 = vrot.slane %v813_v39, 2  ;;  %v1061_v61 = vadd.s32 %v1060_v44, %v1046_v32 }
  0x6f   : > { %v660_v10 = vrot.slane %v659_v38, 1  ;;  %v907_v11 = vadd.s32 %v906_v50, %v905_v5  ;;  %v938_v12 = vrot.slane %v937_v51, 2  ;;  %v1031_v13 = vadd.s32 %v1030_v53, %v1029_v37 }
  0x70   : > { %v691_v15 = vadd.s32 %v690_v54, %v689_v34  ;;  %v784_v16 = vrot.slane %v783_v55, 1  ;;  %v815_v14 = vadd.s32 %v814_v60, %v813_v39  ;;  %v1062_v17 = vrot.slane %v1061_v61, 2 }
  0x71   : > { %v908_v18 = vrot.slane %v907_v11, 1  ;;  %v939_v19 = vadd.s32 %v938_v12, %v937_v51  ;;  %v1032_v20 = vrot.slane %v1031_v13, 1  ;;  %v661_v21 = vadd.s32 %v660_v10, %v659_v38 }
  0x72   : > { %v692_v23 = vrot.slane %v691_v15, 1  ;;  %v816_v24 = vrot.slane %v815_v14, 1  ;;  %v1063_v25 = vadd.s32 %v1062_v17, %v1061_v61  ;;  %v785_v27 = vadd.s32 %v784_v16, %v783_v55 }
  0x73   : > { %v909_v28 = vadd.s32 %v908_v18, %v907_v11  ;;  %v940_v29 = vrot.slane %v939_v19, 1  ;;  %v375_v31 = vcombine.high %v1683_v46, %v1686_v48  ;;  %v1871_v8 = vcombine.high %v1689_v49, %v1710_v57 }
  0x74   : > { %v693_v32 = vadd.s32 %v692_v23, %v691_v15  ;;  %v817_v35 = vadd.s32 %v816_v24, %v815_v14  ;;  %v1064_v5 = vrot.slane %v1063_v25, 1  ;;  %v1033_v34 = vadd.s32 %v1032_v20, %v1031_v13 }
  0x75   : > { %v941_v37 = vadd.s32 %v940_v29, %v939_v19  ;;  %v1875_v36 = vsel %vm1612_vm0, %v375_v31, 4294967295  ;;  %v1879_v39 = vcombine.high %v1713_v58, %v1744_v7 }
  0x76   : > { %v1065_v44 = vadd.s32 %v1064_v5, %v1063_v25  ;;  %v1263_v46 = vsel %vm1260_vm2, %v661_v21, %v693_v32  ;;  %vm407_vm9 = vcmp.eq.s32.totalorder %v1875_v36, 0  ;;  %vm483_vm10 = vcmp.eq.s32.totalorder %v1875_v36, 1 }
  0x77   : > { %v1268_v48 = vsel %vm1265_vm3, %v1263_v46, %v785_v27  ;;  %v479_v49 = vsel %vm407_vm9, %v1871_v8, 0  ;;  %v555_v57 = vsel %vm483_vm10, %v1879_v39, 0  ;;  %vm563_vm0 = vcmp.eq.s32.totalorder %v1875_v36, 2 }
  0x78   : > { %v1273_v47 = vsel %vm1270_vm4, %v1268_v48, %v817_v35  ;;  %v1889_v38 = vadd.s32 %v555_v57, %v479_v49  ;;  %v567_v58 = vsel %vm563_vm0, %v1871_v8, 0  ;;  %vm571_vm11 = vcmp.eq.s32.totalorder %v1875_v36, 3 }
  0x79   : > { %v1278_v7 = vsel %vm1275_vm5, %v1273_v47, %v909_v28  ;;  %v575_v50 = vsel %vm571_vm11, %v1879_v39, 0  ;;  %vm583_vm12 = vcmp.eq.s32.totalorder %v1875_v36, 4  ;;  %vm591_vm13 = vcmp.eq.s32.totalorder %v1875_v36, 5 }
  0x7a   : > { %v1283_v51 = vsel %vm1280_vm6, %v1278_v7, %v941_v37  ;;  %v1898_v53 = vadd.s32 %v575_v50, %v567_v58  ;;  %v587_v54 = vsel %vm583_vm12, %v1871_v8, 0  ;;  %v595_v55 = vsel %vm591_vm13, %v1879_v39, 0 }
  0x7b   : > { %v1288_v60 = vsel %vm1285_vm7, %v1283_v51, %v1033_v34  ;;  %v1903_v61 = vadd.s32 %v595_v55, %v587_v54  ;;  %vm603_vm14 = vcmp.eq.s32.totalorder %v1875_v36, 6  ;;  %vm611_vm15 = vcmp.eq.s32.totalorder %v1875_v36, 7 }
  0x7c   : > { %v1293_v10 = vsel %vm1290_vm8, %v1288_v60, %v1065_v44  ;;  %v607_v11 = vsel %vm603_vm14, %v1871_v8, 0  ;;  %v615_v12 = vsel %vm611_vm15, %v1879_v39, 0  ;;  %v643_v13 = vand.u32 255, %v1889_v38 }
  0x7d   : > { %v1911_v15 = vadd.s32 %v615_v12, %v607_v11  ;;  %v671_v16 = vshra.s32 %v1889_v38, 16  ;;  %v767_v14 = vand.u32 255, %v1898_v53  ;;  %v795_v18 = vshra.s32 %v1898_v53, 16  ;;  %1365 = vst [vmem:[%s1801_s27 + $0x10] sm:$0xff] %v1293_v10 }
  0x7e   : > { %v662_v17 = vrot.slane %v643_v13, 4  ;;  %v891_v19 = vand.u32 255, %v1903_v61  ;;  %v919_v20 = vshra.s32 %v1903_v61, 16  ;;  %vm628_vm9 = vcmp.eq.s32.totalorder %v1644_v22, 9 }
  0x7f   : > { %v675_v21 = vand.u32 255, %v671_v16  ;;  %v786_v23 = vrot.slane %v767_v14, 4  ;;  %v1015_v24 = vand.u32 255, %v1911_v15  ;;  %v1043_v25 = vshra.s32 %v1911_v15, 16 }
  0x80   : > { %v663_v27 = vadd.s32 %v662_v17, %v643_v13  ;;  %v799_v28 = vand.u32 255, %v795_v18  ;;  %v910_v29 = vrot.slane %v891_v19, 4  ;;  %v923_v31 = vand.u32 255, %v919_v20 }
  0x81   : > { %v694_v32 = vrot.slane %v675_v21, 4  ;;  %v787_v35 = vadd.s32 %v786_v23, %v767_v14  ;;  %v1034_v5 = vrot.slane %v1015_v24, 4  ;;  %v1047_v37 = vand.u32 255, %v1043_v25 }
  0x82   : > { %v664_v34 = vrot.slane %v663_v27, 2  ;;  %v818_v44 = vrot.slane %v799_v28, 4  ;;  %v911_v46 = vadd.s32 %v910_v29, %v891_v19  ;;  %v942_v48 = vrot.slane %v923_v31, 4 }
  0x83   : > { %v695_v49 = vadd.s32 %v694_v32, %v675_v21  ;;  %v788_v57 = vrot.slane %v787_v35, 2  ;;  %v1035_v47 = vadd.s32 %v1034_v5, %v1015_v24  ;;  %v1066_v58 = vrot.slane %v1047_v37, 4 }
  0x84   : > { %v665_v7 = vadd.s32 %v664_v34, %v663_v27  ;;  %v819_v50 = vadd.s32 %v818_v44, %v799_v28  ;;  %v912_v51 = vrot.slane %v911_v46, 2  ;;  %v943_v54 = vadd.s32 %v942_v48, %v923_v31 }
  0x85   : > { %v696_v55 = vrot.slane %v695_v49, 2  ;;  %v789_v60 = vadd.s32 %v788_v57, %v787_v35  ;;  %v1036_v10 = vrot.slane %v1035_v47, 2  ;;  %v1067_v11 = vadd.s32 %v1066_v58, %v1047_v37 }
  0x86   : > { %v666_v12 = vrot.slane %v665_v7, 1  ;;  %v820_v13 = vrot.slane %v819_v50, 2  ;;  %v913_v16 = vadd.s32 %v912_v51, %v911_v46  ;;  %v944_v14 = vrot.slane %v943_v54, 2 }
  0x87   : > { %v697_v17 = vadd.s32 %v696_v55, %v695_v49  ;;  %v790_v18 = vrot.slane %v789_v60, 1  ;;  %v1037_v19 = vadd.s32 %v1036_v10, %v1035_v47  ;;  %v1068_v20 = vrot.slane %v1067_v11, 2 }
  0x88   : > { %v667_v21 = vadd.s32 %v666_v12, %v665_v7  ;;  %v821_v23 = vadd.s32 %v820_v13, %v819_v50  ;;  %v914_v24 = vrot.slane %v913_v16, 1  ;;  %v945_v25 = vadd.s32 %v944_v14, %v943_v54 }
  0x89   : > { %v698_v27 = vrot.slane %v697_v17, 1  ;;  %v791_v28 = vadd.s32 %v790_v18, %v789_v60  ;;  %v1038_v29 = vrot.slane %v1037_v19, 1  ;;  %v1069_v31 = vadd.s32 %v1068_v20, %v1067_v11 }
  0x8a   : > { %v822_v32 = vrot.slane %v821_v23, 1  ;;  %v915_v35 = vadd.s32 %v914_v24, %v913_v16  ;;  %v946_v5 = vrot.slane %v945_v25, 1  ;;  %v624_v37 = vsel %vm620_vm1, %v1677_v42, 0 }
  0x8b   : > { %v699_v34 = vadd.s32 %v698_v27, %v697_v17  ;;  %v1039_v44 = vadd.s32 %v1038_v29, %v1037_v19  ;;  %v1070_v46 = vrot.slane %v1069_v31, 1  ;;  %v632_v57 = vsel %vm628_vm9, %v1696_v52, 0 }
  0x8c   : > { %v823_v48 = vadd.s32 %v822_v32, %v821_v23  ;;  %v947_v49 = vadd.s32 %v946_v5, %v945_v25  ;;  %v700_v47 = vshra.s32 %v1727_v63, 8  ;;  %v1929_v50 = vadd.s32 %v632_v57, %v624_v37 }
  0x8d   : > { %v1071_v58 = vadd.s32 %v1070_v46, %v1069_v31  ;;  %v1264_v7 = vsel %vm1260_vm2, %v667_v21, %v699_v34  ;;  %v1461_v51 = vshrl.u32 %v1727_v63, 24  ;;  %v824_v55 = vshra.s32 %v1729_v0, 8 }
  0x8e   : > { %v1269_v42 = vsel %vm1265_vm3, %v1264_v7, %v791_v28  ;;  %v704_v54 = vand.u32 255, %v700_v47  ;;  %v1465_v22 = vshrl.u32 %v1729_v0, 24  ;;  %v948_v52 = vshra.s32 %v1731_v2, 8 }
  0x8f   : > { %v1274_v60 = vsel %vm1270_vm4, %v1269_v42, %v823_v48  ;;  %v740_v10 = vrot.slane %v1461_v51, 4  ;;  %v1469_v11 = vshrl.u32 %v1731_v2, 24  ;;  %v828_v16 = vand.u32 255, %v824_v55 }
  0x90   : > { %v1279_v12 = vsel %vm1275_vm5, %v1274_v60, %v915_v35  ;;  %v708_v13 = vrot.slane %v704_v54, 4  ;;  %v864_v14 = vrot.slane %v1465_v22, 4  ;;  %v952_v18 = vand.u32 255, %v948_v52 }
  0x91   : > { %v1284_v63 = vsel %vm1280_vm6, %v1279_v12, %v947_v49  ;;  %v741_v17 = vadd.s32 %v1461_v51, %v740_v10  ;;  %v988_v19 = vrot.slane %v1469_v11, 4  ;;  %v832_v21 = vrot.slane %v828_v16, 4 }
  0x92   : > { %v1289_v0 = vsel %vm1285_vm7, %v1284_v63, %v1039_v44  ;;  %v709_v20 = vadd.s32 %v708_v13, %v704_v54  ;;  %v865_v23 = vadd.s32 %v1465_v22, %v864_v14  ;;  %v956_v2 = vrot.slane %v952_v18, 4 }
  0x93   : > { %v1294_v24 = vsel %vm1290_vm8, %v1289_v0, %v1071_v58  ;;  %v742_v25 = vrot.slane %v741_v17, 2  ;;  %v989_v27 = vadd.s32 %v1469_v11, %v988_v19  ;;  %v833_v29 = vadd.s32 %v832_v21, %v828_v16 }
  0x94   : > { %v710_v28 = vrot.slane %v709_v20, 2  ;;  %v866_v31 = vrot.slane %v865_v23, 2  ;;  %v957_v35 = vadd.s32 %v956_v2, %v952_v18  ;;  %v1136_v37 = vand.u32 255, %v1929_v50  ;;  %1366 = vst [vmem:[%s1801_s27 + $0x18] sm:$0xff] %v1294_v24 }
  0x95   : > { %v743_v32 = vadd.s32 %v742_v25, %v741_v17  ;;  %v990_v5 = vrot.slane %v989_v27, 2  ;;  %v834_v46 = vrot.slane %v833_v29, 2  ;;  %v1164_v48 = vshra.s32 %v1929_v50, 16 }
  0x96   : > { %v711_v34 = vadd.s32 %v710_v28, %v709_v20  ;;  %v867_v44 = vadd.s32 %v866_v31, %v865_v23  ;;  %v958_v57 = vrot.slane %v957_v35, 2  ;;  %v1140_v58 = vrot.slane %v1136_v37, 4 }
  0x97   : > { %v744_v49 = vrot.slane %v743_v32, 1  ;;  %v991_v47 = vadd.s32 %v990_v5, %v989_v27  ;;  %v835_v51 = vadd.s32 %v834_v46, %v833_v29  ;;  %v1168_v54 = vand.u32 255, %v1164_v48 }
  0x98   : > { %v712_v7 = vrot.slane %v711_v34, 1  ;;  %v868_v42 = vrot.slane %v867_v44, 1  ;;  %v959_v22 = vadd.s32 %v958_v57, %v957_v35  ;;  %v1141_v10 = vadd.s32 %v1140_v58, %v1136_v37 }
  0x99   : > { %v745_v55 = vadd.s32 %v744_v49, %v743_v32  ;;  %v992_v60 = vrot.slane %v991_v47, 1  ;;  %v836_v11 = vrot.slane %v835_v51, 1  ;;  %v1172_v13 = vrot.slane %v1168_v54, 4 }
  0x9a   : > { %v713_v52 = vadd.s32 %v712_v7, %v711_v34  ;;  %v1945_v12 = vadd.s32 %v868_v42, %v867_v44  ;;  %v960_v16 = vrot.slane %v959_v22, 1  ;;  %v1142_v63 = vrot.slane %v1141_v10, 2 }
  0x9b   : > { %v1947_v14 = vadd.s32 %v992_v60, %v991_v47  ;;  %vm621_vm10 = vcmp.eq.s32.totalorder %v1737_v4, 8  ;;  %v837_v17 = vadd.s32 %v836_v11, %v835_v51  ;;  %v1173_v18 = vadd.s32 %v1172_v13, %v1168_v54 }
  0x9c   : > { %v625_v19 = vsel %vm621_vm10, %v1741_v6, 0  ;;  %vm629_vm0 = vcmp.eq.s32.totalorder %v1737_v4, 9  ;;  %v961_v0 = vadd.s32 %v960_v16, %v959_v22  ;;  %v1143_v20 = vadd.s32 %v1142_v63, %v1141_v10 }
  0x9d   : > { %v633_v21 = vsel %vm629_vm0, %v1767_v30, 0  ;;  %v701_v23 = vshra.s32 %v1779_v40, 8  ;;  %v1174_v24 = vrot.slane %v1173_v18, 2  ;;  %v1462_v2 = vshrl.u32 %v1779_v40, 24 }
  0x9e   : > { %v1954_v25 = vadd.s32 %v633_v21, %v625_v19  ;;  %v825_v27 = vshra.s32 %v1781_v41, 8  ;;  %v1144_v28 = vrot.slane %v1143_v20, 1  ;;  %v1466_v31 = vshrl.u32 %v1781_v41, 24 }
  0x9f   : > { %v705_v29 = vand.u32 255, %v701_v23  ;;  %v949_v6 = vshra.s32 %v1793_v56, 8  ;;  %v1175_v4 = vadd.s32 %v1174_v24, %v1173_v18  ;;  %v746_v32 = vrot.slane %v1462_v2, 4 }
  0xa0   : > { %v829_v35 = vand.u32 255, %v825_v27  ;;  %v1470_v30 = vshrl.u32 %v1793_v56, 24  ;;  %v1145_v5 = vadd.s32 %v1144_v28, %v1143_v20  ;;  %v870_v34 = vrot.slane %v1466_v31, 4 }
  0xa1   : > { %v714_v37 = vrot.slane %v705_v29, 4  ;;  %v953_v46 = vand.u32 255, %v949_v6  ;;  %v1176_v44 = vrot.slane %v1175_v4, 1  ;;  %v747_v48 = vadd.s32 %v1462_v2, %v746_v32 }
  0xa2   : > { %v838_v40 = vrot.slane %v829_v35, 4  ;;  %v994_v49 = vrot.slane %v1470_v30, 4  ;;  %v871_v47 = vadd.s32 %v1466_v31, %v870_v34  ;;  %v1137_v41 = vand.u32 255, %v1954_v25 }
  0xa3   : > { %v715_v57 = vadd.s32 %v714_v37, %v705_v29  ;;  %v962_v58 = vrot.slane %v953_v46, 4  ;;  %v1177_v7 = vadd.s32 %v1176_v44, %v1175_v4  ;;  %v748_v51 = vrot.slane %v747_v48, 2 }
  0xa4   : > { %v839_v42 = vadd.s32 %v838_v40, %v829_v35  ;;  %v995_v54 = vadd.s32 %v1470_v30, %v994_v49  ;;  %v872_v60 = vrot.slane %v871_v47, 2  ;;  %v1146_v10 = vrot.slane %v1137_v41, 4 }
  0xa5   : > { %v716_v22 = vrot.slane %v715_v57, 2  ;;  %v963_v56 = vadd.s32 %v962_v58, %v953_v46  ;;  %v1295_v11 = vsel %vm1260_vm2, %v1145_v5, %v1177_v7  ;;  %v749_v13 = vadd.s32 %v748_v51, %v747_v48 }
  0xa6   : > { %v840_v16 = vrot.slane %v839_v42, 2  ;;  %v996_v63 = vrot.slane %v995_v54, 2  ;;  %v1299_v18 = vsel %vm1265_vm3, %v1295_v11, %v713_v52  ;;  %v873_v20 = vadd.s32 %v872_v60, %v871_v47 }
  0xa7   : > { %v717_v19 = vadd.s32 %v716_v22, %v715_v57  ;;  %v964_v21 = vrot.slane %v963_v56, 2  ;;  %v1303_v23 = vsel %vm1270_vm4, %v1299_v18, %v745_v55  ;;  %v750_v24 = vrot.slane %v749_v13, 1 }
  0xa8   : > { %v841_v2 = vadd.s32 %v840_v16, %v839_v42  ;;  %v997_v27 = vadd.s32 %v996_v63, %v995_v54  ;;  %v1307_v28 = vsel %vm1275_vm5, %v1303_v23, %v837_v17  ;;  %v874_v31 = vrot.slane %v873_v20, 1 }
  0xa9   : > { %v718_v29 = vrot.slane %v717_v19, 1  ;;  %v965_v6 = vadd.s32 %v964_v21, %v963_v56  ;;  %v1311_v4 = vsel %vm1280_vm6, %v1307_v28, %v1945_v12  ;;  %v1968_v32 = vadd.s32 %v750_v24, %v749_v13 }
  0xaa   : > { %v842_v35 = vrot.slane %v841_v2, 1  ;;  %v998_v52 = vrot.slane %v997_v27, 1  ;;  %v1315_v30 = vsel %vm1285_vm7, %v1311_v4, %v961_v0  ;;  %v1973_v55 = vadd.s32 %v874_v31, %v873_v20 }
  0xab   : > { %v1971_v5 = vadd.s32 %v718_v29, %v717_v19  ;;  %v966_v37 = vrot.slane %v965_v6, 1  ;;  %v1319_v17 = vsel %vm1290_vm8, %v1315_v30, %v1947_v14  ;;  %v1147_v12 = vadd.s32 %v1146_v10, %v1137_v41 }
  0xac   : > { %v1977_v34 = vadd.s32 %v842_v35, %v841_v2  ;;  %v1979_v46 = vadd.s32 %v998_v52, %v997_v27  ;;  %v1165_v48 = vshra.s32 %v1954_v25, 16  ;;  %vm622_vm11 = vcmp.eq.s32.totalorder %v1817_v26, 8  ;;  %1367 = vst [vmem:[%s1801_s27 + $0x20] sm:$0xff] %v1319_v17 }
  0xad   : > { %v1981_v44 = vadd.s32 %v966_v37, %v965_v6  ;;  %v1148_v0 = vrot.slane %v1147_v12, 2  ;;  %v626_v40 = vsel %vm622_vm11, %v1822_v33, 0  ;;  %vm630_vm12 = vcmp.eq.s32.totalorder %v1817_v26, 9 }
  0xae   : > { %v702_v49 = vshra.s32 %v1840_v43, 8  ;;  %v1169_v14 = vand.u32 255, %v1165_v48  ;;  %v634_v57 = vsel %vm630_vm12, %v1828_v1, 0  ;;  %v1463_v47 = vshrl.u32 %v1840_v43, 24 }
  0xaf   : > { %v826_v58 = vshra.s32 %v1842_v45, 8  ;;  %v1149_v41 = vadd.s32 %v1148_v0, %v1147_v12  ;;  %v1992_v7 = vadd.s32 %v634_v57, %v626_v40  ;;  %v1467_v42 = vshrl.u32 %v1842_v45, 24 }
  0xb0   : > { %v706_v51 = vand.u32 255, %v702_v49  ;;  %v1178_v54 = vrot.slane %v1169_v14, 4  ;;  %v752_v33 = vrot.slane %v1463_v47, 4  ;;  %v950_v26 = vshra.s32 %v1854_v62, 8 }
  0xb1   : > { %v830_v22 = vand.u32 255, %v826_v58  ;;  %v1150_v60 = vrot.slane %v1149_v41, 1  ;;  %v876_v10 = vrot.slane %v1467_v42, 4  ;;  %v1471_v1 = vshrl.u32 %v1854_v62, 24 }
  0xb2   : > { %v720_v56 = vrot.slane %v706_v51, 4  ;;  %v1179_v11 = vadd.s32 %v1178_v54, %v1169_v14  ;;  %v753_v43 = vadd.s32 %v1463_v47, %v752_v33  ;;  %v954_v16 = vand.u32 255, %v950_v26 }
  0xb3   : > { %v844_v13 = vrot.slane %v830_v22, 4  ;;  %v1151_v63 = vadd.s32 %v1150_v60, %v1149_v41  ;;  %v877_v19 = vadd.s32 %v1467_v42, %v876_v10  ;;  %v1000_v20 = vrot.slane %v1471_v1, 4 }
  0xb4   : > { %v721_v18 = vadd.s32 %v720_v56, %v706_v51  ;;  %v1180_v21 = vrot.slane %v1179_v11, 2  ;;  %v754_v45 = vrot.slane %v753_v43, 2  ;;  %v968_v24 = vrot.slane %v954_v16, 4 }
  0xb5   : > { %v845_v23 = vadd.s32 %v844_v13, %v830_v22  ;;  %v878_v27 = vrot.slane %v877_v19, 2  ;;  %v1001_v28 = vadd.s32 %v1471_v1, %v1000_v20  ;;  %v1138_v29 = vand.u32 255, %v1992_v7 }
  0xb6   : > { %v722_v2 = vrot.slane %v721_v18, 2  ;;  %v1181_v31 = vadd.s32 %v1180_v21, %v1179_v11  ;;  %v755_v6 = vadd.s32 %v754_v45, %v753_v43  ;;  %v969_v4 = vadd.s32 %v968_v24, %v954_v16 }
  0xb7   : > { %v846_v62 = vrot.slane %v845_v23, 2  ;;  %v879_v52 = vadd.s32 %v878_v27, %v877_v19  ;;  %v1002_v30 = vrot.slane %v1001_v28, 2  ;;  %v1152_v37 = vrot.slane %v1138_v29, 4 }
  0xb8   : > { %v723_v35 = vadd.s32 %v722_v2, %v721_v18  ;;  %v1182_v17 = vrot.slane %v1181_v31, 1  ;;  %v756_v12 = vrot.slane %v755_v6, 1  ;;  %v970_v0 = vrot.slane %v969_v4, 2 }
  0xb9   : > { %v847_v48 = vadd.s32 %v846_v62, %v845_v23  ;;  %v880_v49 = vrot.slane %v879_v52, 1  ;;  %v1003_v14 = vadd.s32 %v1002_v30, %v1001_v28  ;;  %v1153_v57 = vadd.s32 %v1152_v37, %v1138_v29 }
  0xba   : > { %v724_v40 = vrot.slane %v723_v35, 1  ;;  %v1183_v47 = vadd.s32 %v1182_v17, %v1181_v31  ;;  %v1998_v58 = vadd.s32 %v756_v12, %v755_v6  ;;  %v971_v51 = vadd.s32 %v970_v0, %v969_v4 }
  0xbb   : > { %v848_v41 = vrot.slane %v847_v48, 1  ;;  %v2002_v54 = vadd.s32 %v880_v49, %v879_v52  ;;  %v1004_v33 = vrot.slane %v1003_v14, 1  ;;  %v1154_v22 = vrot.slane %v1153_v57, 2 }
  0xbc   : > { %v2000_v42 = vadd.s32 %v724_v40, %v723_v35  ;;  %v1296_v26 = vsel %vm1260_vm2, %v1151_v63, %v1183_v47  ;;  %v972_v56 = vrot.slane %v971_v51, 1  ;;  %v1166_v10 = vshra.s32 %v1992_v7, 16 }
  0xbd   : > { %v2005_v60 = vadd.s32 %v848_v41, %v847_v48  ;;  %v1300_v1 = vsel %vm1265_vm3, %v1296_v26, %v1971_v5  ;;  %v2010_v11 = vadd.s32 %v1004_v33, %v1003_v14  ;;  %v1155_v43 = vadd.s32 %v1154_v22, %v1153_v57 }
  0xbe   : > { %vm623_vm13 = vcmp.eq.s32.totalorder %v1875_v36, 8  ;;  %v1304_v13 = vsel %vm1270_vm4, %v1300_v1, %v1968_v32  ;;  %v2015_v16 = vadd.s32 %v972_v56, %v971_v51  ;;  %v1170_v18 = vand.u32 255, %v1166_v10 }
  0xbf   : > { %v627_v63 = vsel %vm623_vm13, %v1871_v8, 0  ;;  %v1308_v19 = vsel %vm1275_vm5, %v1304_v13, %v1977_v34  ;;  %v1156_v20 = vrot.slane %v1155_v43, 1  ;;  %vm631_vm14 = vcmp.eq.s32.totalorder %v1875_v36, 9 }
  0xc0   : > { %v703_v5 = vshra.s32 %v1889_v38, 8  ;;  %v1312_v21 = vsel %vm1280_vm6, %v1308_v19, %v1973_v55  ;;  %v1184_v45 = vrot.slane %v1170_v18, 4  ;;  %v635_v23 = vsel %vm631_vm14, %v1879_v39, 0 }
  0xc1   : > { %v1464_v32 = vshrl.u32 %v1889_v38, 24  ;;  %v1316_v8 = vsel %vm1285_vm7, %v1312_v21, %v1981_v44  ;;  %v1157_v24 = vadd.s32 %v1156_v20, %v1155_v43  ;;  %v2028_v2 = vadd.s32 %v635_v23, %v627_v63 }
  0xc2   : > { %v707_v34 = vand.u32 255, %v703_v5  ;;  %v1320_v36 = vsel %vm1290_vm8, %v1316_v8, %v1979_v46  ;;  %v1185_v27 = vadd.s32 %v1184_v45, %v1170_v18  ;;  %v827_v55 = vshra.s32 %v1898_v53, 8 }
  0xc3   : > { %v758_v28 = vrot.slane %v1464_v32, 4  ;;  %v1468_v39 = vshrl.u32 %v1898_v53, 24  ;;  %v951_v38 = vshra.s32 %v1903_v61, 8  ;;  %v1472_v44 = vshrl.u32 %v1903_v61, 24  ;;  %1368 = vst [vmem:[%s1801_s27 + $0x28] sm:$0xff] %v1320_v36 }
  0xc4   : > { %v726_v29 = vrot.slane %v707_v34, 4  ;;  %v1186_v31 = vrot.slane %v1185_v27, 2  ;;  %v831_v62 = vand.u32 255, %v827_v55  ;;  %v1139_v46 = vand.u32 255, %v2028_v2 }
  0xc5   : > { %v759_v6 = vadd.s32 %v1464_v32, %v758_v28  ;;  %v882_v35 = vrot.slane %v1468_v39, 4  ;;  %v955_v52 = vand.u32 255, %v951_v38  ;;  %v1006_v12 = vrot.slane %v1472_v44, 4 }
  0xc6   : > { %v727_v4 = vadd.s32 %v726_v29, %v707_v34  ;;  %v1187_v30 = vadd.s32 %v1186_v31, %v1185_v27  ;;  %v850_v17 = vrot.slane %v831_v62, 4  ;;  %v1158_v40 = vrot.slane %v1139_v46, 4 }
  0xc7   : > { %v760_v37 = vrot.slane %v759_v6, 2  ;;  %v883_v0 = vadd.s32 %v1468_v39, %v882_v35  ;;  %v974_v53 = vrot.slane %v955_v52, 4  ;;  %v1007_v47 = vadd.s32 %v1472_v44, %v1006_v12 }
  0xc8   : > { %v728_v48 = vrot.slane %v727_v4, 2  ;;  %v1188_v49 = vrot.slane %v1187_v30, 1  ;;  %v851_v57 = vadd.s32 %v850_v17, %v831_v62  ;;  %v1159_v33 = vadd.s32 %v1158_v40, %v1139_v46 }
  0xc9   : > { %v761_v14 = vadd.s32 %v760_v37, %v759_v6  ;;  %v884_v61 = vrot.slane %v883_v0, 2  ;;  %v975_v51 = vadd.s32 %v974_v53, %v955_v52  ;;  %v1008_v10 = vrot.slane %v1007_v47, 2 }
  0xca   : > { %v729_v41 = vadd.s32 %v728_v48, %v727_v4  ;;  %v1189_v22 = vadd.s32 %v1188_v49, %v1187_v30  ;;  %v852_v56 = vrot.slane %v851_v57, 2  ;;  %v1160_v18 = vrot.slane %v1159_v33, 2 }
  0xcb   : > { %v762_v26 = vrot.slane %v761_v14, 1  ;;  %v885_v43 = vadd.s32 %v884_v61, %v883_v0  ;;  %v976_v13 = vrot.slane %v975_v51, 2  ;;  %v1009_v5 = vadd.s32 %v1008_v10, %v1007_v47 }
  0xcc   : > { %v730_v1 = vrot.slane %v729_v41, 1  ;;  %v1297_v63 = vsel %vm1260_vm2, %v1157_v24, %v1189_v22  ;;  %v853_v20 = vadd.s32 %v852_v56, %v851_v57  ;;  %v1161_v27 = vadd.s32 %v1160_v18, %v1159_v33 }
  0xcd   : > { %v2039_v19 = vadd.s32 %v762_v26, %v761_v14  ;;  %v1301_v21 = vsel %vm1265_vm3, %v1297_v63, %v2000_v42  ;;  %v886_v23 = vrot.slane %v885_v43, 1  ;;  %v977_v32 = vadd.s32 %v976_v13, %v975_v51 }
  0xce   : > { %v2043_v45 = vadd.s32 %v730_v1, %v729_v41  ;;  %v1305_v8 = vsel %vm1270_vm4, %v1301_v21, %v1998_v58  ;;  %v854_v34 = vrot.slane %v853_v20, 1  ;;  %v1010_v36 = vrot.slane %v1009_v5, 1 }
  0xcf   : > { %v1309_v24 = vsel %vm1275_vm5, %v1305_v8, %v2005_v60  ;;  %v2049_v28 = vadd.s32 %v886_v23, %v885_v43  ;;  %v978_v55 = vrot.slane %v977_v32, 1  ;;  %v1167_v29 = vshra.s32 %v2028_v2, 16 }
  0xd0   : > { %v1313_v42 = vsel %vm1280_vm6, %v1309_v24, %v2002_v54  ;;  %v2054_v39 = vadd.s32 %v854_v34, %v853_v20  ;;  %v2056_v38 = vadd.s32 %v1010_v36, %v1009_v5  ;;  %v1162_v31 = vrot.slane %v1161_v27, 1 }
  0xd1   : > { %v1317_v58 = vsel %vm1285_vm7, %v1313_v42, %v2015_v16  ;;  %v2060_v6 = vadd.s32 %v978_v55, %v977_v32  ;;  %v1171_v60 = vand.u32 255, %v1167_v29  ;;  %v1072_v62 = vshra.s32 %v1733_v3, 8 }
  0xd2   : > { %v1321_v44 = vsel %vm1290_vm8, %v1317_v58, %v2010_v11  ;;  %v1163_v4 = vadd.s32 %v1162_v31, %v1161_v27  ;;  %v1473_v54 = vshrl.u32 %v1733_v3, 24  ;;  %v1196_v35 = vshra.s32 %v1929_v50, 8 }
  0xd3   : > { %v1190_v52 = vrot.slane %v1171_v60, 4  ;;  %v1076_v46 = vand.u32 255, %v1072_v62  ;;  %v1477_v30 = vshrl.u32 %v1929_v50, 24  ;;  %v1073_v16 = vshra.s32 %v1795_v59, 8  ;;  %1369 = vst [vmem:[%s1801_s27 + $0x30] sm:$0xff] %v1321_v44 }
  0xd4   : > { %v1112_v37 = vrot.slane %v1473_v54, 4  ;;  %v1200_v17 = vand.u32 255, %v1196_v35  ;;  %v1474_v12 = vshrl.u32 %v1795_v59, 24  ;;  %v1197_v11 = vshra.s32 %v1954_v25, 8 }
  0xd5   : > { %v1191_v48 = vadd.s32 %v1190_v52, %v1171_v60  ;;  %v1080_v0 = vrot.slane %v1076_v46, 4  ;;  %v1236_v53 = vrot.slane %v1477_v30, 4  ;;  %v1077_v49 = vand.u32 255, %v1073_v16 }
  0xd6   : > { %v1113_v40 = vadd.s32 %v1473_v54, %v1112_v37  ;;  %v1204_v3 = vrot.slane %v1200_v17, 4  ;;  %v1118_v14 = vrot.slane %v1474_v12, 4  ;;  %v1201_v50 = vand.u32 255, %v1197_v11 }
  0xd7   : > { %v1192_v57 = vrot.slane %v1191_v48, 2  ;;  %v1081_v47 = vadd.s32 %v1080_v0, %v1076_v46  ;;  %v1237_v41 = vadd.s32 %v1477_v30, %v1236_v53  ;;  %v1086_v33 = vrot.slane %v1077_v49, 4 }
  0xd8   : > { %v1114_v61 = vrot.slane %v1113_v40, 2  ;;  %v1205_v51 = vadd.s32 %v1204_v3, %v1200_v17  ;;  %v1119_v22 = vadd.s32 %v1474_v12, %v1118_v14  ;;  %v1210_v10 = vrot.slane %v1201_v50, 4 }
  0xd9   : > { %v1193_v26 = vadd.s32 %v1192_v57, %v1191_v48  ;;  %v1082_v59 = vrot.slane %v1081_v47, 2  ;;  %v1238_v56 = vrot.slane %v1237_v41, 2  ;;  %v1087_v13 = vadd.s32 %v1086_v33, %v1077_v49 }
  0xda   : > { %v1115_v1 = vadd.s32 %v1114_v61, %v1113_v40  ;;  %v1206_v43 = vrot.slane %v1205_v51, 2  ;;  %v1120_v18 = vrot.slane %v1119_v22, 2  ;;  %v1211_v21 = vadd.s32 %v1210_v10, %v1201_v50 }
  0xdb   : > { %v1194_v63 = vrot.slane %v1193_v26, 1  ;;  %v1083_v20 = vadd.s32 %v1082_v59, %v1081_v47  ;;  %v1239_v5 = vadd.s32 %v1238_v56, %v1237_v41  ;;  %v1088_v8 = vrot.slane %v1087_v13, 2 }
  0xdc   : > { %v1116_v23 = vrot.slane %v1115_v1, 1  ;;  %v1207_v32 = vadd.s32 %v1206_v43, %v1205_v51  ;;  %v1121_v34 = vadd.s32 %v1120_v18, %v1119_v22  ;;  %v1212_v55 = vrot.slane %v1211_v21, 2 }
  0xdd   : > { %v1195_v36 = vadd.s32 %v1194_v63, %v1193_v26  ;;  %v1084_v27 = vrot.slane %v1083_v20, 1  ;;  %v1240_v24 = vrot.slane %v1239_v5, 1  ;;  %v1089_v31 = vadd.s32 %v1088_v8, %v1087_v13 }
  0xde   : > { %v1117_v29 = vadd.s32 %v1116_v23, %v1115_v1  ;;  %v1208_v42 = vrot.slane %v1207_v32, 1  ;;  %v1122_v58 = vrot.slane %v1121_v34, 1  ;;  %v1213_v54 = vadd.s32 %v1212_v55, %v1211_v21 }
  0xdf   : > { %v1298_v60 = vsel %vm1260_vm2, %v1163_v4, %v1195_v36  ;;  %v1085_v62 = vadd.s32 %v1084_v27, %v1083_v20  ;;  %v1241_v44 = vadd.s32 %v1240_v24, %v1239_v5  ;;  %v1090_v46 = vrot.slane %v1089_v31, 1 }
  0xe0   : > { %v1302_v35 = vsel %vm1265_vm3, %v1298_v60, %v2043_v45  ;;  %v1209_v52 = vadd.s32 %v1208_v42, %v1207_v32  ;;  %v1123_v30 = vadd.s32 %v1122_v58, %v1121_v34  ;;  %v1214_v16 = vrot.slane %v1213_v54, 1 }
  0xe1   : > { %v1306_v37 = vsel %vm1270_vm4, %v1302_v35, %v2039_v19  ;;  %v1323_v17 = vsel %vm1260_vm2, %v1085_v62, %v1117_v29  ;;  %v1478_v12 = vshrl.u32 %v1954_v25, 24  ;;  %v1091_v0 = vadd.s32 %v1090_v46, %v1089_v31 }
  0xe2   : > { %v1310_v4 = vsel %vm1275_vm5, %v1306_v37, %v2054_v39  ;;  %v1327_v48 = vsel %vm1265_vm3, %v1323_v17, %v1209_v52  ;;  %v1074_v45 = vshra.s32 %v1856_v9, 8  ;;  %v1215_v19 = vadd.s32 %v1214_v16, %v1213_v54 }
  0xe3   : > { %v1314_v53 = vsel %vm1280_vm6, %v1310_v4, %v2049_v28  ;;  %v1331_v11 = vsel %vm1270_vm4, %v1327_v48, %v1241_v44  ;;  %v1242_v40 = vrot.slane %v1478_v12, 4  ;;  %v1324_v39 = vsel %vm1260_vm2, %v1091_v0, %v1123_v30 }
  0xe4   : > { %v1318_v25 = vsel %vm1285_vm7, %v1314_v53, %v2060_v6  ;;  %v1335_v3 = vsel %vm1275_vm5, %v1331_v11, 0  ;;  %v1078_v49 = vand.u32 255, %v1074_v45  ;;  %v1328_v47 = vsel %vm1265_vm3, %v1324_v39, %v1215_v19 }
  0xe5   : > { %v1322_v14 = vsel %vm1290_vm8, %v1318_v25, %v2056_v38  ;;  %v1243_v57 = vadd.s32 %v1478_v12, %v1242_v40  ;;  %v1475_v41 = vshrl.u32 %v1856_v9, 24  ;;  %v1198_v50 = vshra.s32 %v1992_v7, 8  ;;  %1371 = vst [vmem:[%s1801_s27 + $0x40] sm:$0xff] %v1335_v3 }
  0xe6   : > { %v1092_v28 = vrot.slane %v1078_v49, 4  ;;  %v1479_v6 = vshrl.u32 %v1992_v7, 24  ;;  %v1075_v51 = vshra.s32 %v1911_v15, 8  ;;  %v1476_v33 = vshrl.u32 %v1911_v15, 24  ;;  %1370 = vst [vmem:[%s1801_s27 + $0x38] sm:$0xff] %v1322_v14 }
  0xe7   : > { %v1244_v61 = vrot.slane %v1243_v57, 2  ;;  %v1124_v26 = vrot.slane %v1475_v41, 4  ;;  %v1202_v38 = vand.u32 255, %v1198_v50  ;;  %v1199_v59 = vshra.s32 %v2028_v2, 8 }
  0xe8   : > { %v1093_v22 = vadd.s32 %v1092_v28, %v1078_v49  ;;  %v1248_v10 = vrot.slane %v1479_v6, 4  ;;  %v1079_v1 = vand.u32 255, %v1075_v51  ;;  %v1130_v9 = vrot.slane %v1476_v33, 4 }
  0xe9   : > { %v1245_v56 = vadd.s32 %v1244_v61, %v1243_v57  ;;  %v1125_v13 = vadd.s32 %v1475_v41, %v1124_v26  ;;  %v1216_v18 = vrot.slane %v1202_v38, 4  ;;  %v1203_v63 = vand.u32 255, %v1199_v59 }
  0xea   : > { %v1094_v43 = vrot.slane %v1093_v22, 2  ;;  %v1249_v7 = vadd.s32 %v1479_v6, %v1248_v10  ;;  %v1098_v5 = vrot.slane %v1079_v1, 4  ;;  %v1131_v21 = vadd.s32 %v1476_v33, %v1130_v9 }
  0xeb   : > { %v1246_v20 = vrot.slane %v1245_v56, 1  ;;  %v1126_v15 = vrot.slane %v1125_v13, 2  ;;  %v1217_v32 = vadd.s32 %v1216_v18, %v1202_v38  ;;  %v1222_v8 = vrot.slane %v1203_v63, 4 }
  0xec   : > { %v1095_v23 = vadd.s32 %v1094_v43, %v1093_v22  ;;  %v1250_v36 = vrot.slane %v1249_v7, 2  ;;  %v1099_v27 = vadd.s32 %v1098_v5, %v1079_v1  ;;  %v1132_v24 = vrot.slane %v1131_v21, 2 }
  0xed   : > { %v1247_v34 = vadd.s32 %v1246_v20, %v1245_v56  ;;  %v1127_v29 = vadd.s32 %v1126_v15, %v1125_v13  ;;  %v1218_v42 = vrot.slane %v1217_v32, 2  ;;  %v1223_v31 = vadd.s32 %v1222_v8, %v1203_v63 }
  0xee   : > { %v1096_v55 = vrot.slane %v1095_v23, 1  ;;  %v1251_v60 = vadd.s32 %v1250_v36, %v1249_v7  ;;  %v1100_v62 = vrot.slane %v1099_v27, 2  ;;  %v1133_v44 = vadd.s32 %v1132_v24, %v1131_v21 }
  0xef   : > { %v1332_v58 = vsel %vm1270_vm4, %v1328_v47, %v1247_v34  ;;  %v1128_v52 = vrot.slane %v1127_v29, 1  ;;  %v1219_v46 = vadd.s32 %v1218_v42, %v1217_v32  ;;  %v1224_v4 = vrot.slane %v1223_v31, 2 }
  0xf0   : > { %v1336_v54 = vsel %vm1275_vm5, %v1332_v58, 0  ;;  %v1097_v35 = vadd.s32 %v1096_v55, %v1095_v23  ;;  %v1252_v30 = vrot.slane %v1251_v60, 1  ;;  %v1101_v37 = vadd.s32 %v1100_v62, %v1099_v27 }
  0xf1   : > { %v1134_v17 = vrot.slane %v1133_v44, 1  ;;  %v1129_v16 = vadd.s32 %v1128_v52, %v1127_v29  ;;  %v1220_v12 = vrot.slane %v1219_v46, 1  ;;  %v1480_v48 = vshrl.u32 %v2028_v2, 24  ;;  %1372 = vst [vmem:[%s1801_s27 + $0x48] sm:$0xff] %v1336_v54 }
  0xf2   : > { %v1253_v0 = vadd.s32 %v1252_v30, %v1251_v60  ;;  %v1102_v45 = vrot.slane %v1101_v37, 1  ;;  %v1225_v19 = vadd.s32 %v1224_v4, %v1223_v31 }
  0xf3   : > { %v1221_v53 = vadd.s32 %v1220_v12, %v1219_v46  ;;  %v1325_v11 = vsel %vm1260_vm2, %v1097_v35, %v1129_v16  ;;  %v1254_v40 = vrot.slane %v1480_v48, 4  ;;  %v1135_v25 = vadd.s32 %v1134_v17, %v1133_v44 }
  0xf4   : > { %v1103_v39 = vadd.s32 %v1102_v45, %v1101_v37  ;;  %v1226_v49 = vrot.slane %v1225_v19, 1 }
  0xf5   : > { %v1329_v3 = vsel %vm1265_vm3, %v1325_v11, %v1221_v53  ;;  %v1255_v14 = vadd.s32 %v1480_v48, %v1254_v40 }
  0xf6   : > { %v1333_v57 = vsel %vm1270_vm4, %v1329_v3, %v1253_v0  ;;  %v1227_v28 = vadd.s32 %v1226_v49, %v1225_v19  ;;  %v1326_v50 = vsel %vm1260_vm2, %v1103_v39, %v1135_v25 }
  0xf7   : > { %v1337_v2 = vsel %vm1275_vm5, %v1333_v57, 0  ;;  %v1256_v47 = vrot.slane %v1255_v14, 2 }
  0xf8   : > { %1373 = vst [vmem:[%s1801_s27 + $0x50] sm:$0xff] %v1337_v2  ;;  %v1330_v6 = vsel %vm1265_vm3, %v1326_v50, %v1227_v28 }
  0xf9   : > { %v1257_v41 = vadd.s32 %v1256_v47, %v1255_v14 }
  0xfb   : > { %v1258_v61 = vrot.slane %v1257_v41, 1 }
  0xfd   : > { %v1259_v51 = vadd.s32 %v1258_v61, %v1257_v41 }
  0xff   : > { %v1334_v33 = vsel %vm1270_vm4, %v1330_v6, %v1259_v51 }
 0x100   : > { %v1338_v22 = vsel %vm1275_vm5, %v1334_v33, 0 }
 0x101   : > { %1374 = vst [vmem:[%s1801_s27 + $0x58] sm:$0xff] %v1338_v22 }
 0x102 PF: > { %s12_s11 = sadd.s32 1, %s1549_s11   ;;  %s2129_s9 = smov %s1545_s10 }
 0x103   : > { %p9_p7 = scmp.ge.s32.totalorder %s12_s11, 4   ;;  %s2130_s10 = smov %s2132_s12 }
 0x105   :  { %11 = sbr.rel (!%p9_p7) target bundleno = 2 (0x2), region = 65 }

</bundles_post_ra>
